<compile_context>
chip_gen: v5e
topology: v5e:2x2
jax: 0.10.0
libtpu: 0.0.40
codegen_flags: <defaults>
</compile_context>

<pallas_src>
import jax
import jax.numpy as jnp
import numpy as np
from jax.experimental import pallas as pl
from jax.experimental.pallas import tpu as pltpu

EPS = 1e-5  # torch LayerNorm default eps


# ---------------------------------------------------------------------------
# shared math (used both inside the Pallas kernel and in the pure-JAX ref)
# ---------------------------------------------------------------------------
def _erf(x):
    # Abramowitz & Stegun 7.1.26 polynomial, |abs err| < 1.5e-7.
    a1, a2, a3, a4, a5 = 0.254829592, -0.284496736, 1.421413741, -1.453152027, 1.061405429
    p = 0.3275911
    s = jnp.where(x >= 0.0, 1.0, -1.0)
    ax = jnp.abs(x)
    t = 1.0 / (1.0 + p * ax)
    poly = ((((a5 * t + a4) * t + a3) * t + a2) * t + a1) * t
    return s * (1.0 - poly * jnp.exp(-ax * ax))


def _gelu_exact(x):
    # matches torch.nn.GELU() (approximate='none')
    return 0.5 * x * (1.0 + _erf(x * 0.7071067811865476))


def _layernorm(h, gamma, beta):
    mean = jnp.mean(h, axis=-1, keepdims=True)
    var = jnp.mean((h - mean) ** 2, axis=-1, keepdims=True)
    return (h - mean) * jax.lax.rsqrt(var + EPS) * gamma + beta


# ---------------------------------------------------------------------------
# Pallas kernel: one ConvNeXt layer per grid step, activation carried in o_ref
# ---------------------------------------------------------------------------
def _make_kernel(L: int, K: int):
    pad = K // 2  # causal=False -> symmetric reflection pad, odd K only

    def kernel(x_ref, dw_ref, ng_ref, nb_ref, c1w_ref, c1b_ref, c2w_ref,
               c2b_ref, o_ref):
        layer = pl.program_id(1)

        # Layer 0: seed the resident carry (output block) with the in_conv'ed
        # input.  For layer > 0 the output block still holds the previous
        # layer's result (same output block index across the layer axis).
        @pl.when(layer == 0)
        def _():
            o_ref[0] = x_ref[0]

        h = o_ref[0]  # (L, C) float32 carry

        # ---- DepthwiseConv1d with reflection pad, via sublane rolls (XLU) ----
        # rolled[s][t, :] == h[(t + s) % L, :]
        rolled = {0: h}
        for s in range(-pad, pad + 1):
            if s != 0:
                rolled[s] = pltpu.roll(h, (-s) % L, axis=0)

        rows = jax.lax.broadcasted_iota(jnp.int32, (L, 1), 0)
        left_masks = [rows == t for t in range(pad)]              # rows 0..pad-1
        right_masks = [rows == (L - 1 - u) for u in range(pad)]   # rows L-1..L-pad

        dw = dw_ref[0]                      # (K, C)
        acc = jnp.zeros_like(h)
        for d in range(-pad, pad + 1):      # tap offset, weight row j = pad + d
            val = rolled[d]
            if d < 0:
                # output rows t < -d need reflected h[-(t+d)] == rolled[-d-2t][t]
                for t in range(-d):
                    val = jnp.where(left_masks[t], rolled[-d - 2 * t], val)
            elif d > 0:
                # rows t = L-1-u (u < d) need h[2(L-1)-(t+d)] == rolled[2u-d][t]
                for u in range(d):
                    val = jnp.where(right_masks[u], rolled[2 * u - d], val)
            acc = acc + val * dw[pad + d:pad + d + 1, :]

        # ---- LayerNorm1d over channels ----
        hn = _layernorm(acc, ng_ref[0], nb_ref[0])

        # ---- FeedForward1d: 1x1 conv -> gelu -> 1x1 conv (MXU) ----
        f = jnp.dot(hn, c1w_ref[0], preferred_element_type=jnp.float32) + c1b_ref[0]
        f = _gelu_exact(f)
        f = jnp.dot(f, c2w_ref[0], preferred_element_type=jnp.float32) + c2b_ref[0]

        o_ref[0] = (h + f).astype(o_ref.dtype)  # residual, stays resident

    return kernel


# ---------------------------------------------------------------------------
# wrapper: in_conv / post_norm / out_conv in XLA, layer stack in Pallas
# ---------------------------------------------------------------------------
def convnext1d(x_ncl, params):
    """x_ncl: (B, in_channels, L) -> (B, out_channels, L)   (PyTorch NCL)."""
    (in_w, in_b, dw_w, ng, nb, c1w, c1b, c2w, c2b, pg, pb, ow, ob) = params
    B, Cin, L = x_ncl.shape
    num_layers, K, C = dw_w.shape
    F = c1w.shape[-1]
    pad = K // 2
    assert K % 2 == 1, "only odd kernel_size supported (even K is ill-defined in the module)"
    assert L > pad, "reflection padding needs L > kernel_size // 2"

    # in_conv (1x1 over tiny Cin) fused with the NCL->NLC transpose in XLA.
    x = jnp.transpose(x_ncl, (0, 2, 1)).astype(jnp.float32) @ in_w + in_b  # (B, L, C)

    kernel = _make_kernel(L, K)

    def layer_spec(shape):
        return pl.BlockSpec((1,) + shape, lambda b, l: (l, 0, 0))

    in_specs = [
        pl.BlockSpec((1, L, C), lambda b, l: (b, 0, 0)),  # x (read only at l == 0)
        layer_spec((K, C)),   # dw_w
        layer_spec((1, C)),   # layernorm gamma
        layer_spec((1, C)),   # layernorm beta
        layer_spec((C, F)),   # ffn c1 weight
        layer_spec((1, F)),   # ffn c1 bias
        layer_spec((F, C)),   # ffn c2 weight
        layer_spec((1, C)),   # ffn c2 bias
    ]
    out_spec = pl.BlockSpec((1, L, C), lambda b, l: (b, 0, 0))  # carry across l

    # VMEM budget: double-buffered x/o tiles + double-buffered one layer's
    # weights + the (L, F) FFN intermediate.  Clamped to 64 MiB (<= physical
    # VMEM on v5e / v6e / v7x); the 16/32 MiB defaults are too small for
    # realistic shapes.
    est = (2 * 2 * L * C
           + 2 * (C * F + F * C + K * C + 4 * C + 2 * F)
           + 2 * L * F) * 4 + (4 << 20)
    vmem_limit = int(min(64 << 20, max(32 << 20, est)))

    h = pl.pallas_call(
        kernel,
        out_shape=jax.ShapeDtypeStruct((B, L, C), jnp.float32),
        grid_spec=pltpu.PrefetchScalarGridSpec(
            num_scalar_prefetch=0,
            grid=(B, num_layers),
            in_specs=in_specs,
            out_specs=out_spec,
        ),
        compiler_params=pltpu.CompilerParams(
            dimension_semantics=("parallel", "arbitrary"),
            vmem_limit_bytes=vmem_limit,
        ),
    )(x, dw_w, ng, nb, c1w, c1b, c2w, c2b)

    # post_norm + out_conv (tiny Cout) fused with the NLC->NCL transpose in XLA.
    h = _layernorm(h, pg, pb)
    o = h @ ow + ob
    return jnp.transpose(o, (0, 2, 1))


# ---------------------------------------------------------------------------
# pure-JAX reference (same math, no Pallas) for a correctness check
# ---------------------------------------------------------------------------
def reference(x_ncl, params):
    (in_w, in_b, dw_w, ng, nb, c1w, c1b, c2w, c2b, pg, pb, ow, ob) = params
    num_layers, K, C = dw_w.shape
    pad = K // 2
    x = jnp.transpose(x_ncl, (0, 2, 1))  # (B, L, Cin)
    L = x.shape[1]

    h = x @ in_w + in_b
    for l in range(num_layers):
        res = h
        hp = jnp.pad(h, ((0, 0), (pad, pad), (0, 0)), mode="reflect")
        acc = sum(hp[:, j:j + L, :] * dw_w[l, j] for j in range(K))
        hn = _layernorm(acc, ng[l], nb[l])
        f = _gelu_exact(hn @ c1w[l] + c1b[l])
        f = f @ c2w[l] + c2b[l]
        h = res + f
    h = _layernorm(h, pg, pb)
    o = h @ ow + ob
    return jnp.transpose(o, (0, 2, 1))


# ---------------------------------------------------------------------------
# deterministic synthetic parameters (shapes follow the module's __init__)
# ---------------------------------------------------------------------------
def init_params(key, Cin, Cout, C, F, K, num_layers):
    ks = jax.random.split(key, 13)

    def rnd(k, shape, scale=0.1):
        return jax.random.normal(k, shape, jnp.float32) * scale

    in_w = rnd(ks[0], (Cin, C))                      # in_conv weight (transposed)
    in_b = rnd(ks[1], (1, C))                        # in_conv bias
    dw_w = rnd(ks[2], (num_layers, K, C), 0.3)       # depthwise conv weights
    ng = 1.0 + rnd(ks[3], (num_layers, 1, C), 0.05)  # layernorm gamma
    nb = rnd(ks[4], (num_layers, 1, C), 0.05)        # layernorm beta
    c1w = rnd(ks[5], (num_layers, C, F))             # ffn c1 weight
    c1b = rnd(ks[6], (num_layers, 1, F))             # ffn c1 bias
    c2w = rnd(ks[7], (num_layers, F, C))             # ffn c2 weight
    c2b = rnd(ks[8], (num_layers, 1, C))             # ffn c2 bias
    pg = 1.0 + rnd(ks[9], (1, C), 0.05)              # post_norm gamma
    pb = rnd(ks[10], (1, C), 0.05)                   # post_norm beta
    ow = rnd(ks[11], (C, Cout))                      # out_conv weight (transposed)
    ob = rnd(ks[12], (1, Cout))                      # out_conv bias
    return (in_w, in_b, dw_w, ng, nb, c1w, c1b, c2w, c2b, pg, pb, ow, ob)


if __name__ == "__main__":
    B, Cin, Cout = 2, 4, 6
    C, F = 128, 256        # inter_channels, ffn_channels (lane-dense: x128)
    K, L, NL = 7, 32, 3    # kernel_size, length (multiple of 8), num_layers

    key = jax.random.PRNGKey(0)
    kx, kp = jax.random.split(key)
    x = jax.random.normal(kx, (B, Cin, L), jnp.float32)
    params = init_params(kp, Cin, Cout, C, F, K, NL)

    y = jax.block_until_ready(convnext1d(x, params))

    y_ref = reference(x, params)
    np.testing.assert_allclose(np.asarray(y), np.asarray(y_ref), rtol=5e-4, atol=5e-4)

    print("KERNEL_OK")
</pallas_src>

<mosaic_0001>
module attributes {stable_mosaic.version = 11 : i64} {
  func.func @kernel(%arg0: i32, %arg1: i32, %arg2: memref<1x32x128xf32, #tpu.memory_space<vmem>>, %arg3: memref<1x7x128xf32, #tpu.memory_space<vmem>>, %arg4: memref<1x1x128xf32, #tpu.memory_space<vmem>>, %arg5: memref<1x1x128xf32, #tpu.memory_space<vmem>>, %arg6: memref<1x128x256xf32, #tpu.memory_space<vmem>>, %arg7: memref<1x1x256xf32, #tpu.memory_space<vmem>>, %arg8: memref<1x256x128xf32, #tpu.memory_space<vmem>>, %arg9: memref<1x1x128xf32, #tpu.memory_space<vmem>>, %arg10: memref<1x32x128xf32, #tpu.memory_space<vmem>>) attributes {dimension_semantics = [#tpu.dimension_semantics<parallel>, #tpu.dimension_semantics<arbitrary>], iteration_bounds = array<i64: 2, 3>, scalar_prefetch = 0 : i64, scratch_operands = 0 : i64, tpu.core_type = #tpu.core_type<tc>, window_params = [{transform_indices = @transform_0, window_bounds = array<i64: 1, 32, 128>}, {transform_indices = @transform_1, window_bounds = array<i64: 1, 7, 128>}, {transform_indices = @transform_2, window_bounds = array<i64: 1, 1, 128>}, {transform_indices = @transform_3, window_bounds = array<i64: 1, 1, 128>}, {transform_indices = @transform_4, window_bounds = array<i64: 1, 128, 256>}, {transform_indices = @transform_5, window_bounds = array<i64: 1, 1, 256>}, {transform_indices = @transform_6, window_bounds = array<i64: 1, 256, 128>}, {transform_indices = @transform_7, window_bounds = array<i64: 1, 1, 128>}, {transform_indices = @transform_8, window_bounds = array<i64: 1, 32, 128>}]} {
    %c0_i32 = arith.constant 0 : i32
    %0 = arith.cmpi eq, %arg1, %c0_i32 : i32
    %1 = arith.extui %0 : i1 to i32
    %c0_i32_0 = arith.constant 0 : i32
    %2 = arith.cmpi ne, %1, %c0_i32_0 : i32
    scf.if %2 {
      %c0_56 = arith.constant 0 : index
      %c0_57 = arith.constant 0 : index
      %c0_58 = arith.constant 0 : index
      %176 = vector.load %arg2[%c0_56, %c0_57, %c0_58] : memref<1x32x128xf32, #tpu.memory_space<vmem>>, vector<1x32x128xf32>
      %177 = vector.shape_cast %176 : vector<1x32x128xf32> to vector<32x128xf32>
      %c0_59 = arith.constant 0 : index
      %c0_60 = arith.constant 0 : index
      %c0_61 = arith.constant 0 : index
      %178 = vector.load %arg10[%c0_59, %c0_60, %c0_61] : memref<1x32x128xf32, #tpu.memory_space<vmem>>, vector<1x32x128xf32>
      %179 = vector.shape_cast %178 : vector<1x32x128xf32> to vector<32x128xf32>
      %180 = vector.shape_cast %177 : vector<32x128xf32> to vector<1x32x128xf32>
      tpu.vector_store %arg10[%c0_59, %c0_60, %c0_61], %180 {strides = array<i32>} : memref<1x32x128xf32, #tpu.memory_space<vmem>>, vector<1x32x128xf32>,
    } else {
    }
    %c0 = arith.constant 0 : index
    %c0_1 = arith.constant 0 : index
    %c0_2 = arith.constant 0 : index
    %3 = vector.load %arg10[%c0, %c0_1, %c0_2] : memref<1x32x128xf32, #tpu.memory_space<vmem>>, vector<1x32x128xf32>
    %4 = vector.shape_cast %3 : vector<1x32x128xf32> to vector<32x128xf32>
    %c3_i32 = arith.constant 3 : i32
    %5 = tpu.dynamic_rotate %4 by %c3_i32 dim 0 : vector<32x128xf32>, i32 -> vector<32x128xf32>
    %c2_i32 = arith.constant 2 : i32
    %6 = tpu.dynamic_rotate %4 by %c2_i32 dim 0 : vector<32x128xf32>, i32 -> vector<32x128xf32>
    %c1_i32 = arith.constant 1 : i32
    %7 = tpu.dynamic_rotate %4 by %c1_i32 dim 0 : vector<32x128xf32>, i32 -> vector<32x128xf32>
    %c31_i32 = arith.constant 31 : i32
    %8 = tpu.dynamic_rotate %4 by %c31_i32 dim 0 : vector<32x128xf32>, i32 -> vector<32x128xf32>
    %c30_i32 = arith.constant 30 : i32
    %9 = tpu.dynamic_rotate %4 by %c30_i32 dim 0 : vector<32x128xf32>, i32 -> vector<32x128xf32>
    %c29_i32 = arith.constant 29 : i32
    %10 = tpu.dynamic_rotate %4 by %c29_i32 dim 0 : vector<32x128xf32>, i32 -> vector<32x128xf32>
    %11 = tpu.iota {dimensions = array<i32: 0>} : vector<32x1xi32>
    %c0_i32_3 = arith.constant 0 : i32
    %12 = vector.broadcast %c0_i32_3 : i32 to vector<32x1xi32>
    %13 = arith.cmpi eq, %11, %12 : vector<32x1xi32>
    %c1_i32_4 = arith.constant 1 : i32
    %14 = vector.broadcast %c1_i32_4 : i32 to vector<32x1xi32>
    %15 = arith.cmpi eq, %11, %14 : vector<32x1xi32>
    %c2_i32_5 = arith.constant 2 : i32
    %16 = vector.broadcast %c2_i32_5 : i32 to vector<32x1xi32>
    %17 = arith.cmpi eq, %11, %16 : vector<32x1xi32>
    %c31_i32_6 = arith.constant 31 : i32
    %18 = vector.broadcast %c31_i32_6 : i32 to vector<32x1xi32>
    %19 = arith.cmpi eq, %11, %18 : vector<32x1xi32>
    %c30_i32_7 = arith.constant 30 : i32
    %20 = vector.broadcast %c30_i32_7 : i32 to vector<32x1xi32>
    %21 = arith.cmpi eq, %11, %20 : vector<32x1xi32>
    %c29_i32_8 = arith.constant 29 : i32
    %22 = vector.broadcast %c29_i32_8 : i32 to vector<32x1xi32>
    %23 = arith.cmpi eq, %11, %22 : vector<32x1xi32>
    %c0_9 = arith.constant 0 : index
    %c0_10 = arith.constant 0 : index
    %c0_11 = arith.constant 0 : index
    %24 = vector.load %arg3[%c0_9, %c0_10, %c0_11] : memref<1x7x128xf32, #tpu.memory_space<vmem>>, vector<1x7x128xf32>
    %25 = vector.shape_cast %24 : vector<1x7x128xf32> to vector<7x128xf32>
    %cst = arith.constant 0.000000e+00 : f32
    %26 = vector.broadcast %cst : f32 to vector<32x128xf32>
    %27 = vector.shape_cast %13 : vector<32x1xi1> to vector<32x1xi1>
    %28 = vector.broadcast %27 : vector<32x1xi1> to vector<32x128xi1>
    %29 = arith.select %28, %10, %5 : vector<32x128xi1>, vector<32x128xf32>
    %30 = vector.shape_cast %15 : vector<32x1xi1> to vector<32x1xi1>
    %31 = vector.broadcast %30 : vector<32x1xi1> to vector<32x128xi1>
    %32 = arith.select %31, %8, %29 : vector<32x128xi1>, vector<32x128xf32>
    %33 = vector.shape_cast %17 : vector<32x1xi1> to vector<32x1xi1>
    %34 = vector.broadcast %33 : vector<32x1xi1> to vector<32x128xi1>
    %35 = arith.select %34, %7, %32 : vector<32x128xi1>, vector<32x128xf32>
    %36 = vector.extract_strided_slice %25 {offsets = [0, 0], sizes = [1, 128], strides = [1, 1]} : vector<7x128xf32> to vector<1x128xf32>
    %37 = vector.broadcast %36 : vector<1x128xf32> to vector<32x128xf32>
    %38 = arith.mulf %35, %37 : vector<32x128xf32>
    %39 = arith.addf %26, %38 : vector<32x128xf32>
    %40 = vector.shape_cast %13 : vector<32x1xi1> to vector<32x1xi1>
    %41 = vector.broadcast %40 : vector<32x1xi1> to vector<32x128xi1>
    %42 = arith.select %41, %9, %6 : vector<32x128xi1>, vector<32x128xf32>
    %43 = vector.shape_cast %15 : vector<32x1xi1> to vector<32x1xi1>
    %44 = vector.broadcast %43 : vector<32x1xi1> to vector<32x128xi1>
    %45 = arith.select %44, %4, %42 : vector<32x128xi1>, vector<32x128xf32>
    %46 = vector.extract_strided_slice %25 {offsets = [1, 0], sizes = [1, 128], strides = [1, 1]} : vector<7x128xf32> to vector<1x128xf32>
    %47 = vector.broadcast %46 : vector<1x128xf32> to vector<32x128xf32>
    %48 = arith.mulf %45, %47 : vector<32x128xf32>
    %49 = arith.addf %39, %48 : vector<32x128xf32>
    %50 = vector.shape_cast %13 : vector<32x1xi1> to vector<32x1xi1>
    %51 = vector.broadcast %50 : vector<32x1xi1> to vector<32x128xi1>
    %52 = arith.select %51, %8, %7 : vector<32x128xi1>, vector<32x128xf32>
    %53 = vector.extract_strided_slice %25 {offsets = [2, 0], sizes = [1, 128], strides = [1, 1]} : vector<7x128xf32> to vector<1x128xf32>
    %54 = vector.broadcast %53 : vector<1x128xf32> to vector<32x128xf32>
    %55 = arith.mulf %52, %54 : vector<32x128xf32>
    %56 = arith.addf %49, %55 : vector<32x128xf32>
    %57 = vector.extract_strided_slice %25 {offsets = [3, 0], sizes = [1, 128], strides = [1, 1]} : vector<7x128xf32> to vector<1x128xf32>
    %58 = vector.broadcast %57 : vector<1x128xf32> to vector<32x128xf32>
    %59 = arith.mulf %4, %58 : vector<32x128xf32>
    %60 = arith.addf %56, %59 : vector<32x128xf32>
    %61 = vector.shape_cast %19 : vector<32x1xi1> to vector<32x1xi1>
    %62 = vector.broadcast %61 : vector<32x1xi1> to vector<32x128xi1>
    %63 = arith.select %62, %7, %8 : vector<32x128xi1>, vector<32x128xf32>
    %64 = vector.extract_strided_slice %25 {offsets = [4, 0], sizes = [1, 128], strides = [1, 1]} : vector<7x128xf32> to vector<1x128xf32>
    %65 = vector.broadcast %64 : vector<1x128xf32> to vector<32x128xf32>
    %66 = arith.mulf %63, %65 : vector<32x128xf32>
    %67 = arith.addf %60, %66 : vector<32x128xf32>
    %68 = vector.shape_cast %19 : vector<32x1xi1> to vector<32x1xi1>
    %69 = vector.broadcast %68 : vector<32x1xi1> to vector<32x128xi1>
    %70 = arith.select %69, %6, %9 : vector<32x128xi1>, vector<32x128xf32>
    %71 = vector.shape_cast %21 : vector<32x1xi1> to vector<32x1xi1>
    %72 = vector.broadcast %71 : vector<32x1xi1> to vector<32x128xi1>
    %73 = arith.select %72, %4, %70 : vector<32x128xi1>, vector<32x128xf32>
    %74 = vector.extract_strided_slice %25 {offsets = [5, 0], sizes = [1, 128], strides = [1, 1]} : vector<7x128xf32> to vector<1x128xf32>
    %75 = vector.broadcast %74 : vector<1x128xf32> to vector<32x128xf32>
    %76 = arith.mulf %73, %75 : vector<32x128xf32>
    %77 = arith.addf %67, %76 : vector<32x128xf32>
    %78 = vector.shape_cast %19 : vector<32x1xi1> to vector<32x1xi1>
    %79 = vector.broadcast %78 : vector<32x1xi1> to vector<32x128xi1>
    %80 = arith.select %79, %5, %10 : vector<32x128xi1>, vector<32x128xf32>
    %81 = vector.shape_cast %21 : vector<32x1xi1> to vector<32x1xi1>
    %82 = vector.broadcast %81 : vector<32x1xi1> to vector<32x128xi1>
    %83 = arith.select %82, %7, %80 : vector<32x128xi1>, vector<32x128xf32>
    %84 = vector.shape_cast %23 : vector<32x1xi1> to vector<32x1xi1>
    %85 = vector.broadcast %84 : vector<32x1xi1> to vector<32x128xi1>
    %86 = arith.select %85, %8, %83 : vector<32x128xi1>, vector<32x128xf32>
    %87 = vector.extract_strided_slice %25 {offsets = [6, 0], sizes = [1, 128], strides = [1, 1]} : vector<7x128xf32> to vector<1x128xf32>
    %88 = vector.broadcast %87 : vector<1x128xf32> to vector<32x128xf32>
    %89 = arith.mulf %86, %88 : vector<32x128xf32>
    %90 = arith.addf %77, %89 : vector<32x128xf32>
    %c0_12 = arith.constant 0 : index
    %c0_13 = arith.constant 0 : index
    %c0_14 = arith.constant 0 : index
    %91 = vector.load %arg4[%c0_12, %c0_13, %c0_14] : memref<1x1x128xf32, #tpu.memory_space<vmem>>, vector<1x1x128xf32>
    %92 = vector.shape_cast %91 : vector<1x1x128xf32> to vector<1x128xf32>
    %c0_15 = arith.constant 0 : index
    %c0_16 = arith.constant 0 : index
    %c0_17 = arith.constant 0 : index
    %93 = vector.load %arg5[%c0_15, %c0_16, %c0_17] : memref<1x1x128xf32, #tpu.memory_space<vmem>>, vector<1x1x128xf32>
    %94 = vector.shape_cast %93 : vector<1x1x128xf32> to vector<1x128xf32>
    %cst_18 = arith.constant dense<0.000000e+00> : vector<32xf32>
    %95 = vector.multi_reduction <add>, %90, %cst_18 [1] : vector<32x128xf32> to vector<32xf32>
    %96 = vector.shape_cast %95 : vector<32xf32> to vector<32x1xf32>
    %cst_19 = arith.constant 1.280000e+02 : f32
    %97 = vector.broadcast %cst_19 : f32 to vector<32x1xf32>
    %98 = arith.divf %96, %97 : vector<32x1xf32>
    %99 = vector.broadcast %98 : vector<32x1xf32> to vector<32x128xf32>
    %100 = arith.subf %90, %99 : vector<32x128xf32>
    %101 = arith.mulf %100, %100 : vector<32x128xf32>
    %cst_20 = arith.constant dense<0.000000e+00> : vector<32xf32>
    %102 = vector.multi_reduction <add>, %101, %cst_20 [1] : vector<32x128xf32> to vector<32xf32>
    %103 = vector.shape_cast %102 : vector<32xf32> to vector<32x1xf32>
    %cst_21 = arith.constant 1.280000e+02 : f32
    %104 = vector.broadcast %cst_21 : f32 to vector<32x1xf32>
    %105 = arith.divf %103, %104 : vector<32x1xf32>
    %106 = vector.broadcast %98 : vector<32x1xf32> to vector<32x128xf32>
    %107 = arith.subf %90, %106 : vector<32x128xf32>
    %cst_22 = arith.constant 9.99999974E-6 : f32
    %108 = vector.broadcast %cst_22 : f32 to vector<32x1xf32>
    %109 = arith.addf %105, %108 : vector<32x1xf32>
    %110 = math.rsqrt %109 : vector<32x1xf32>
    %111 = vector.broadcast %110 : vector<32x1xf32> to vector<32x128xf32>
    %112 = arith.mulf %107, %111 : vector<32x128xf32>
    %113 = vector.broadcast %92 : vector<1x128xf32> to vector<32x128xf32>
    %114 = arith.mulf %112, %113 : vector<32x128xf32>
    %115 = vector.broadcast %94 : vector<1x128xf32> to vector<32x128xf32>
    %116 = arith.addf %114, %115 : vector<32x128xf32>
    %c0_23 = arith.constant 0 : index
    %c0_24 = arith.constant 0 : index
    %c0_25 = arith.constant 0 : index
    %117 = vector.load %arg6[%c0_23, %c0_24, %c0_25] : memref<1x128x256xf32, #tpu.memory_space<vmem>>, vector<1x128x256xf32>
    %118 = vector.shape_cast %117 : vector<1x128x256xf32> to vector<128x256xf32>
    %cst_26 = arith.constant dense<0.000000e+00> : vector<32x256xf32>
    %119 = tpu.matmul %116, %118, %cst_26 {dimension_numbers = #tpu.dot_dimension_numbers<[1], [0], [0], [1], [0, 0, 1, 1], [], []>} : vector<32x128xf32>, vector<128x256xf32>, vector<32x256xf32> -> vector<32x256xf32>
    %c0_27 = arith.constant 0 : index
    %c0_28 = arith.constant 0 : index
    %c0_29 = arith.constant 0 : index
    %120 = vector.load %arg7[%c0_27, %c0_28, %c0_29] : memref<1x1x256xf32, #tpu.memory_space<vmem>>, vector<1x1x256xf32>
    %121 = vector.shape_cast %120 : vector<1x1x256xf32> to vector<1x256xf32>
    %122 = vector.broadcast %121 : vector<1x256xf32> to vector<32x256xf32>
    %123 = arith.addf %119, %122 : vector<32x256xf32>
    %cst_30 = arith.constant 5.000000e-01 : f32
    %124 = vector.broadcast %cst_30 : f32 to vector<32x256xf32>
    %125 = arith.mulf %124, %123 : vector<32x256xf32>
    %cst_31 = arith.constant 0.707106769 : f32
    %126 = vector.broadcast %cst_31 : f32 to vector<32x256xf32>
    %127 = arith.mulf %123, %126 : vector<32x256xf32>
    %cst_32 = arith.constant 0.000000e+00 : f32
    %128 = vector.broadcast %cst_32 : f32 to vector<32x256xf32>
    %129 = arith.cmpf oge, %127, %128 : vector<32x256xf32>
    %cst_33 = arith.constant 1.000000e+00 : f32
    %cst_34 = arith.constant -1.000000e+00 : f32
    %130 = vector.broadcast %cst_33 : f32 to vector<32x256xf32>
    %131 = vector.broadcast %cst_34 : f32 to vector<32x256xf32>
    %132 = arith.select %129, %130, %131 : vector<32x256xi1>, vector<32x256xf32>
    %133 = math.absf %127 : vector<32x256xf32>
    %cst_35 = arith.constant 0.327591091 : f32
    %134 = vector.broadcast %cst_35 : f32 to vector<32x256xf32>
    %135 = arith.mulf %134, %133 : vector<32x256xf32>
    %cst_36 = arith.constant 1.000000e+00 : f32
    %136 = vector.broadcast %cst_36 : f32 to vector<32x256xf32>
    %137 = arith.addf %136, %135 : vector<32x256xf32>
    %cst_37 = arith.constant 1.000000e+00 : f32
    %138 = vector.broadcast %cst_37 : f32 to vector<32x256xf32>
    %139 = arith.divf %138, %137 : vector<32x256xf32>
    %cst_38 = arith.constant 1.06140542 : f32
    %140 = vector.broadcast %cst_38 : f32 to vector<32x256xf32>
    %141 = arith.mulf %140, %139 : vector<32x256xf32>
    %cst_39 = arith.constant -1.45315206 : f32
    %142 = vector.broadcast %cst_39 : f32 to vector<32x256xf32>
    %143 = arith.addf %141, %142 : vector<32x256xf32>
    %144 = arith.mulf %143, %139 : vector<32x256xf32>
    %cst_40 = arith.constant 1.42141378 : f32
    %145 = vector.broadcast %cst_40 : f32 to vector<32x256xf32>
    %146 = arith.addf %144, %145 : vector<32x256xf32>
    %147 = arith.mulf %146, %139 : vector<32x256xf32>
    %cst_41 = arith.constant -0.284496725 : f32
    %148 = vector.broadcast %cst_41 : f32 to vector<32x256xf32>
    %149 = arith.addf %147, %148 : vector<32x256xf32>
    %150 = arith.mulf %149, %139 : vector<32x256xf32>
    %cst_42 = arith.constant 0.254829586 : f32
    %151 = vector.broadcast %cst_42 : f32 to vector<32x256xf32>
    %152 = arith.addf %150, %151 : vector<32x256xf32>
    %153 = arith.mulf %152, %139 : vector<32x256xf32>
    %cst_43 = arith.constant 0.000000e+00 : f32
    %154 = vector.broadcast %cst_43 : f32 to vector<32x256xf32>
    %155 = arith.subf %154, %133 : vector<32x256xf32>
    %156 = arith.mulf %155, %133 : vector<32x256xf32>
    %157 = math.exp %156 : vector<32x256xf32>
    %158 = arith.mulf %153, %157 : vector<32x256xf32>
    %cst_44 = arith.constant 1.000000e+00 : f32
    %159 = vector.broadcast %cst_44 : f32 to vector<32x256xf32>
    %160 = arith.subf %159, %158 : vector<32x256xf32>
    %161 = arith.mulf %132, %160 : vector<32x256xf32>
    %cst_45 = arith.constant 1.000000e+00 : f32
    %162 = vector.broadcast %cst_45 : f32 to vector<32x256xf32>
    %163 = arith.addf %162, %161 : vector<32x256xf32>
    %164 = arith.mulf %125, %163 : vector<32x256xf32>
    %c0_46 = arith.constant 0 : index
    %c0_47 = arith.constant 0 : index
    %c0_48 = arith.constant 0 : index
    %165 = vector.load %arg8[%c0_46, %c0_47, %c0_48] : memref<1x256x128xf32, #tpu.memory_space<vmem>>, vector<1x256x128xf32>
    %166 = vector.shape_cast %165 : vector<1x256x128xf32> to vector<256x128xf32>
    %cst_49 = arith.constant dense<0.000000e+00> : vector<32x128xf32>
    %167 = tpu.matmul %164, %166, %cst_49 {dimension_numbers = #tpu.dot_dimension_numbers<[1], [0], [0], [1], [0, 0, 1, 1], [], []>} : vector<32x256xf32>, vector<256x128xf32>, vector<32x128xf32> -> vector<32x128xf32>
    %c0_50 = arith.constant 0 : index
    %c0_51 = arith.constant 0 : index
    %c0_52 = arith.constant 0 : index
    %168 = vector.load %arg9[%c0_50, %c0_51, %c0_52] : memref<1x1x128xf32, #tpu.memory_space<vmem>>, vector<1x1x128xf32>
    %169 = vector.shape_cast %168 : vector<1x1x128xf32> to vector<1x128xf32>
    %170 = vector.broadcast %169 : vector<1x128xf32> to vector<32x128xf32>
    %171 = arith.addf %167, %170 : vector<32x128xf32>
    %172 = arith.addf %4, %171 : vector<32x128xf32>
    %c0_53 = arith.constant 0 : index
    %c0_54 = arith.constant 0 : index
    %c0_55 = arith.constant 0 : index
    %173 = vector.load %arg10[%c0_53, %c0_54, %c0_55] : memref<1x32x128xf32, #tpu.memory_space<vmem>>, vector<1x32x128xf32>
    %174 = vector.shape_cast %173 : vector<1x32x128xf32> to vector<32x128xf32>
    %175 = vector.shape_cast %172 : vector<32x128xf32> to vector<1x32x128xf32>
    tpu.vector_store %arg10[%c0_53, %c0_54, %c0_55], %175 {strides = array<i32>} : memref<1x32x128xf32, #tpu.memory_space<vmem>>, vector<1x32x128xf32>,
    return
  }
  func.func @transform_0(%arg0: i32, %arg1: i32) -> (i32, i32, i32) {
    %c0_i32 = arith.constant 0 : i32
    %c0_i32_0 = arith.constant 0 : i32
    %c0_i32_1 = arith.constant 0 : i32
    return %arg0, %c0_i32, %c0_i32_0 : i32, i32, i32
  }
  func.func @transform_1(%arg0: i32, %arg1: i32) -> (i32, i32, i32) {
    %c0_i32 = arith.constant 0 : i32
    %c0_i32_0 = arith.constant 0 : i32
    %c0_i32_1 = arith.constant 0 : i32
    return %arg1, %c0_i32, %c0_i32_0 : i32, i32, i32
  }
  func.func @transform_2(%arg0: i32, %arg1: i32) -> (i32, i32, i32) {
    %c0_i32 = arith.constant 0 : i32
    %c0_i32_0 = arith.constant 0 : i32
    %c0_i32_1 = arith.constant 0 : i32
    return %arg1, %c0_i32, %c0_i32_0 : i32, i32, i32
  }
  func.func @transform_3(%arg0: i32, %arg1: i32) -> (i32, i32, i32) {
    %c0_i32 = arith.constant 0 : i32
    %c0_i32_0 = arith.constant 0 : i32
    %c0_i32_1 = arith.constant 0 : i32
    return %arg1, %c0_i32, %c0_i32_0 : i32, i32, i32
  }
  func.func @transform_4(%arg0: i32, %arg1: i32) -> (i32, i32, i32) {
    %c0_i32 = arith.constant 0 : i32
    %c0_i32_0 = arith.constant 0 : i32
    %c0_i32_1 = arith.constant 0 : i32
    return %arg1, %c0_i32, %c0_i32_0 : i32, i32, i32
  }
  func.func @transform_5(%arg0: i32, %arg1: i32) -> (i32, i32, i32) {
    %c0_i32 = arith.constant 0 : i32
    %c0_i32_0 = arith.constant 0 : i32
    %c0_i32_1 = arith.constant 0 : i32
    return %arg1, %c0_i32, %c0_i32_0 : i32, i32, i32
  }
  func.func @transform_6(%arg0: i32, %arg1: i32) -> (i32, i32, i32) {
    %c0_i32 = arith.constant 0 : i32
    %c0_i32_0 = arith.constant 0 : i32
    %c0_i32_1 = arith.constant 0 : i32
    return %arg1, %c0_i32, %c0_i32_0 : i32, i32, i32
  }
  func.func @transform_7(%arg0: i32, %arg1: i32) -> (i32, i32, i32) {
    %c0_i32 = arith.constant 0 : i32
    %c0_i32_0 = arith.constant 0 : i32
    %c0_i32_1 = arith.constant 0 : i32
    return %arg1, %c0_i32, %c0_i32_0 : i32, i32, i32
  }
  func.func @transform_8(%arg0: i32, %arg1: i32) -> (i32, i32, i32) {
    %c0_i32 = arith.constant 0 : i32
    %c0_i32_0 = arith.constant 0 : i32
    %c0_i32_1 = arith.constant 0 : i32
    return %arg0, %c0_i32, %c0_i32_0 : i32, i32, i32
  }
}

</mosaic_0001>

<bundles_post_ra>
// kernel: tpu_custom_call.1
= control target key start
LH: loop header
LB: loop body
LE: loop exit
PB: predicated region body
PF: predicated region fallthrough
CT: control target
= control target key end

     0   :  { %s3327_s0 = inlined_call_operand.hbm [shape: f32[2,32,128], index: 0, kind: input, shape index: {}]   ;;  %s3328_s1 = inlined_call_operand.hbm [shape: f32[3,7,128], index: 1, kind: input, shape index: {}]   ;;  %s3329_s2 = inlined_call_operand.hbm [shape: f32[3,1,128], index: 2, kind: input, shape index: {}]   ;;  %s3330_s3 = inlined_call_operand.hbm [shape: f32[3,1,128], index: 3, kind: input, shape index: {}]   ;;  %s3331_s4 = inlined_call_operand.hbm [shape: f32[3,128,256], index: 4, kind: input, shape index: {}]   ;;  %s3332_s5 = inlined_call_operand.hbm [shape: f32[3,1,256], index: 5, kind: input, shape index: {}]   ;;  %s3333_s6 = inlined_call_operand.hbm [shape: f32[3,256,128], index: 6, kind: input, shape index: {}]   ;;  %s3334_s7 = inlined_call_operand.vmem [shape: f32[3,1,128], index: 7, kind: input, shape index: {}]   ;;  %s3335_s8 = inlined_call_operand.hbm [shape: f32[2,32,128], index: 8, kind: output, shape index: {}]  }
   0x1   :  { %3351 = sst [smem:[#allocation31_spill]] %s3327_s0 }
   0x2   :  { %3352 = sst [smem:[#allocation32_spill]] %s3328_s1 }
   0x3   :  { %3353 = sst [smem:[#allocation33_spill]] %s3330_s3 }
   0x4   :  { %3354 = sst [smem:[#allocation34_spill]] %s3332_s5 }
   0x5   :  { %3355 = sst [smem:[#allocation35_spill]] %s3334_s7 }
   0x6   :  { %3356 = sst [smem:[#allocation36_spill]] %s3335_s8 }
   0x7   :  { %13 = vsyncpa [#allocation3], 0 }
   0x8   :  { %15 = vsyncpa [#allocation3 + $0x1], 0 }
   0x9   :  { %16 = vsyncpa [#allocation6], 0 }
   0xa   :  { %18 = vsyncpa [#allocation6 + $0x1], 0 }
   0xb   :  { %19 = vsyncpa [#allocation9], 0 }
   0xc   :  { %21 = vsyncpa [#allocation9 + $0x1], 0 }
   0xd   :  { %22 = vsyncpa [#allocation12], 0 }
   0xe   :  { %24 = vsyncpa [#allocation12 + $0x1], 0 }
   0xf   :  { %25 = vsyncpa [#allocation4], 0 }
  0x10   :  { %27 = vsyncpa [#allocation4 + $0x1], 0  ;;  %s2307_s27 = smov 0   ;;  %s2309_s28 = smov 0  }
  0x11   :  { %s2311_s29 = smov 0   ;;  %s2313_s30 = smov 0  }
  0x12   :  { %s2315_s9 = smov 0   ;;  %s2317_s10 = smov 0  }
  0x13   :  { %s2319_s11 = smov 0   ;;  %s2321_s12 = smov 0  }
  0x14   :  { %s2323_s13 = smov 0   ;;  %s2325_s14 = smov 0  }
  0x15   :  { %s2327_s15 = smov 0  }
  0x16 LB: > { %3357 = sst [smem:[#allocation20_spill]] %s2220_s29  ;;  %s2361_s16 = sadd.s32 4294967295, %s2252_s15   ;;  %s2252_s15 = sphi %s2327_s15, %s33_s15   ;;  %s2248_s14 = sphi %s2325_s14, %s3411_s14   ;;  %s2244_s13 = sphi %s2323_s13, %s3417_s13   ;;  %s2240_s12 = sphi %s2321_s12, %s3409_s12   ;;  %s2236_s11 = sphi %s2319_s11, %s3416_s11   ;;  %s2232_s10 = sphi %s2317_s10, %s3408_s10   ;;  %s2228_s9 = sphi %s2315_s9, %s3415_s9   ;;  %s2224_s30 = sphi %s2313_s30, %s3414_s30   ;;  %s2220_s29 = sphi %s2311_s29, %s3406_s29   ;;  %s2216_s28 = sphi %s2309_s28, %s3413_s28   ;;  %s2212_s27 = sphi %s2307_s27, %s3412_s27  }
  0x17   : > { %3358 = sst [smem:[#allocation21_spill]] %s2224_s30  ;;  %s42_s17 = sadd.s32 1, %s2244_s13 }
  0x18   : > { %3359 = sst [smem:[#allocation22_spill]] %s2232_s10  ;;  %p2364_p0 = scmp.ge.s32.totalorder %s42_s17, 3 }
  0x19   : > { %3360 = sst [smem:[#allocation23_spill]] %s2236_s11  ;;  %p60_p1 = scmp.eq.s32.totalorder %s2252_s15, 0 }
  0x1a   : > { %3361 = sst [smem:[#allocation24_spill]] %s2240_s12  ;;  %p66_p2 = scmp.eq.s32.totalorder %s2361_s16, 0 }
  0x1b   : > { %3362 = sst [smem:[#allocation25_spill]] %s2248_s14  ;;  %s78_s19 = sadd.s32 1, %s2220_s29 }
  0x1c   : > { %s3419_s17 = smov (%p2364_p0, %s42_s17), 0  ;;  %p85_p3 = scmp.ne.s32.totalorder %s2220_s29, %s2216_s28 }
  0x1d   : > { %3364 = sst [smem:[#allocation26_spill]] %s3419_s17  ;;  %p91_p4 = scmp.ne.s32.totalorder %s2216_s28, %s2212_s27 }
  0x1e   : > { %s75_s20 = ssub.s32 %s2244_s13, %s3419_s17  ;;  %p2382_p6 = por %p85_p3, %p60_p1 }
  0x1f   : > { %p76_p5 = scmp.eq.s32.totalorder %s75_s20, 0  ;;  %p2388_p7 = por %p91_p4, %p66_p2 }
  0x20   : > { %p3341_p8 = scmp.lt.s32.totalorder %s2252_s15, 6  ;;  %s2397_s24 = sand.u32 1, %s2252_s15  }
  0x21   : > { %s3366_s22 = scalar_select %p2388_p7, 1, 0 }
  0x22   : > { %s2394_s23 = scalar_select %p76_p5, %s2220_s29, %s78_s19  }
  0x23   : > { %3367 = sst [smem:[#allocation27_spill]] %s3366_s22  ;;  %s2400_s25 = sand.u32 1, %s2220_s29  }
  0x24   : > { %3368 = sst [smem:[#allocation28_spill]] %s2394_s23  ;;  %s1692_s26 = sshll.u32 %s2400_s25, 3 }
  0x25   : > { %s1693_s27 = sshll.u32 %s2244_s13, 3  ;;  %s3369_s1 = sld [smem:[#allocation32_spill]] }
  0x26   : > { %s323_s12 = scalar_lea.vmem [#allocation5], %s1692_s26  ;;  %p2411_p9 = pnand %p3341_p8, %p2382_p6 }
  0x27   : > { %s331_s7 = sshll.u32 %s323_s12, 4  ;;  %p1702_p10 = scmp.ge.s32.totalorder %s2252_s15, 1  ;;  %s332_s7 = int_to_ptr.vmem [resolvable:$true] %s331_s7 }
  0x28   : > { %p439_p11 = scmp.lt.s32.totalorder %s2252_s15, 7  ;;  %s3338_s17 = scalar_lea.sflag [#allocation6], %s2397_s24 }
  0x29   : > { %s3372_s3 = sld [smem:[#allocation33_spill]]  ;;  %s1698_s12 = sshll.u32 %s2244_s13, 1 }
  0x2a   : > { %p2422_p12 = pnand %p1702_p10, %p439_p11  ;;  %s3373_s5 = sld [smem:[#allocation34_spill]] }
  0x2b   : > { %s327_s8 = scalar_lea.hbm %s3369_s1, %s1693_s27  ;;  %s358_s27 = scalar_lea.vmem [#allocation8], %s2400_s25 }
  0x2c   : > { %s329_s19 = sshll.u32 %s327_s8, 4  ;;  %s365_s20 = sshll.u32 %s358_s27, 4  ;;  %s330_s19 = int_to_ptr.hbm [resolvable:$true] %s329_s19  ;;  %s366_s20 = int_to_ptr.vmem [resolvable:$true] %s365_s20 }
  0x2d   : > { %1741 = dma.hbm_to_vmem [thread:$0]  (!%p2411_p9), %s330_s19, 128, %s332_s7, %s3338_s17  }
  0x2e   : > { %s3343_s7 = scalar_lea.sflag [#allocation9], %s2397_s24  ;;  %s1697_s19 = sshll.u32 %s2400_s25, 1 }
  0x2f   : > { %s361_s26 = scalar_lea.hbm %s3372_s3, %s2244_s13  ;;  %s398_s3 = scalar_lea.vmem [#allocation11], %s1697_s19 }
  0x30   : > { %s363_s1 = sshll.u32 %s361_s26, 4  ;;  %s402_s26 = scalar_lea.hbm %s3373_s5, %s1698_s12  ;;  %s364_s1 = int_to_ptr.hbm [resolvable:$true] %s363_s1 }
  0x31   : > { %1747 = dma.hbm_to_vmem [thread:$0]  (!%p2411_p9), %s364_s1, 16, %s366_s20, %s3343_s7  }
  0x32   : > { %s404_s17 = sshll.u32 %s402_s26, 4  ;;  %s406_s29 = sshll.u32 %s398_s3, 4  ;;  %s405_s17 = int_to_ptr.hbm [resolvable:$true] %s404_s17  ;;  %s407_s29 = int_to_ptr.vmem [resolvable:$true] %s406_s29 }
  0x33   : > { %s3342_s11 = scalar_lea.sflag [#allocation12], %s2397_s24  ;;  %s1686_s1 = sadd.s32 4294967294, %s2252_s15  }
  0x34   : > { %1753 = dma.hbm_to_vmem [thread:$0]  (!%p2411_p9), %s405_s17, 32, %s407_s29, %s3342_s11  }
  0x35   : > { %s45_s20 = sadd.s32 1, %s2248_s14  ;;  %s52_s21 = sadd.s32 1, %s2232_s10 }
  0x36   : > { %s3421_s20 = smov (!%p2364_p0, %s45_s20), %s2248_s14  ;;  %p59_p13 = scmp.ne.s32.totalorder %s2232_s10, %s2228_s9 }
  0x37   : > { %p47_p3 = scmp.ge.s32.totalorder %s3421_s20, 2  ;;  %p65_p4 = scmp.ne.s32.totalorder %s2228_s9, %s2224_s30 }
  0x38   : > { %p2458_p5 = por %p60_p1, %p59_p13  ;;  %p271_p6 = scmp.eq.s32.totalorder %s2361_s16, 5 }
  0x39   : > { %s3423_s20 = smov (%p47_p3, %s3421_s20), 0  ;;  %p2467_p10 = por %p66_p2, %p65_p4 }
  0x3a   : > { %3375 = sst [smem:[#allocation29_spill]] %s3423_s20  ;;  %p2471_p0 = por %p271_p6, %p59_p13 }
  0x3b   : > { %s49_s17 = ssub.s32 %s2248_s14, %s3423_s20  ;;  %p277_p1 = scmp.eq.s32.totalorder %s1686_s1, 5 }
  0x3c   : > { %p50_p11 = scmp.eq.s32.totalorder %s49_s17, 0  ;;  %s297_s19 = sand.u32 1, %s2232_s10  }
  0x3d   : > { %p2478_p8 = por %p277_p1, %p65_p4  ;;  %s1689_s26 = sshll.u32 %s297_s19, 5 }
  0x3e   : > { %s2483_s27 = scalar_select %p50_p11, %s2232_s10, %s52_s21  }
  0x3f   : > { %s1715_s11 = sshll.u32 %s2248_s14, 5  ;;  %s3380_s0 = sld [smem:[#allocation31_spill]] }
  0x40   : > { %3379 = sst [smem:[#allocation30_spill]] %s2483_s27  ;;  %s301_s20 = scalar_lea.vmem [#allocation2], %s1689_s26 }
  0x41   : > { %s309_s1 = sshll.u32 %s301_s20, 4  ;;  %p3381_p2 = scmp.lt.s32.totalorder %s2252_s15, 6  ;;  %s310_s1 = int_to_ptr.vmem [resolvable:$true] %s309_s1 }
  0x42   : > { %s344_s14 = scalar_lea.hbm %s3329_s2, %s2244_s13  ;;  %s298_s27 = scalar_lea.sflag [#allocation3], %s297_s19 }
  0x43   : > { %p1736_p13 = pnand %p3381_p2, %p2458_p5  ;;  %s3350_s10 = smov 128  }
  0x44   : > { %s2255_s5 = smov 8   ;;  %s3382_s20 = scalar_lea.sflag [#allocation6], %s2397_s24 }
  0x45   : > { %s306_s30 = scalar_lea.hbm %s3380_s0, %s1715_s11  ;;  %s341_s11 = scalar_lea.vmem [#allocation7], %s2400_s25 }
  0x46   : > { %s307_s22 = sshll.u32 %s306_s30, 4  ;;  %s346_s30 = sshll.u32 %s344_s14, 4  ;;  %s308_s22 = int_to_ptr.hbm [resolvable:$true] %s307_s22  ;;  %s347_s30 = int_to_ptr.hbm [resolvable:$true] %s346_s30 }
  0x47   : > { %1738 = dma.hbm_to_vmem [thread:$0]  (!%p1736_p13), %s308_s22, 512, %s310_s1, %s298_s27, %s3350_s10, %s3350_s10, %s2255_s5  }
  0x48   : > { %s348_s7 = sshll.u32 %s341_s11, 4  ;;  %s1694_s3 = sshll.u32 %s2400_s25, 8  ;;  %s349_s7 = int_to_ptr.vmem [resolvable:$true] %s348_s7 }
  0x49   : > { %1744 = dma.hbm_to_vmem [thread:$0]  (!%p2411_p9), %s347_s30, 16, %s349_s7, %s3382_s20  }
  0x4a   : > { %s1716_s26 = sshll.u32 %s2244_s13, 8  ;;  %s376_s22 = scalar_lea.vmem [#allocation10], %s1694_s3 }
  0x4b   : > { %s381_s17 = scalar_lea.hbm %s3331_s4, %s1716_s26  ;;  %s384_s14 = sshll.u32 %s376_s22, 4  ;;  %s385_s14 = int_to_ptr.vmem [resolvable:$true] %s384_s14 }
  0x4c   : > { %s382_s0 = sshll.u32 %s381_s17, 4  ;;  %s2256_s27 = smov 256   ;;  %s383_s0 = int_to_ptr.hbm [resolvable:$true] %s382_s0 }
  0x4d   : > { %s2257_s1 = smov 16   ;;  %s3383_s11 = scalar_lea.sflag [#allocation9], %s2397_s24 }
  0x4e   : > { %1750 = dma.hbm_to_vmem [thread:$0]  (!%p2411_p9), %s383_s0, 4096, %s385_s14, %s3383_s11, %s2256_s27, %s2256_s27, %s2257_s1  }
  0x4f   : > { %s422_s25 = scalar_lea.hbm %s3333_s6, %s1716_s26  ;;  %s417_s20 = scalar_lea.vmem [#allocation13], %s1694_s3 }
  0x50   : > { %s423_s7 = sshll.u32 %s422_s25, 4  ;;  %s425_s21 = sshll.u32 %s417_s20, 4  ;;  %s424_s7 = int_to_ptr.hbm [resolvable:$true] %s423_s7  ;;  %s426_s21 = int_to_ptr.vmem [resolvable:$true] %s425_s21 }
  0x51   : > { %s3384_s19 = smov 128   ;;  %s3385_s17 = scalar_lea.sflag [#allocation12], %s2397_s24 }
  0x52   : > { %1756 = dma.hbm_to_vmem [thread:$0]  (!%p2411_p9), %s424_s7, 4096, %s426_s21, %s3385_s17, %s3384_s19, %s3384_s19, %s2255_s5  }
  0x53   : > { %443 = sbr.rel (%p2422_p12) target bundleno = 785 (0x311), region = 52  ;;  %s2527_s0 = sand.u32 (!%p2422_p12), 1, %s2228_s9  }
  0x54   : > { %s1703_s10 = sshll.u32 (!%p2422_p12), %s2527_s0, 5  ;;  %s446_s3 = scalar_lea.sflag (!%p2422_p12), [#allocation3], %s2527_s0 }
  0x55   : > { %s2531_s26 = scalar_lea.vmem (!%p2422_p12), [#allocation2], %s1703_s10 }
  0x58   : > { %2191 = dma.done.wait (%p2467_p10), %s446_s3, 512  }
  0x59   : > { %2193 = vsyncadd (%p2467_p10), %s446_s3, 4294966784  ;;  %s455_s24 = sand.u32 1, %s2361_s16   ;;  %s2539_s8 = sand.u32 1, %s2216_s28  }
  0x5a   : > { %s1704_s5 = sshll.u32 %s2539_s8, 3  ;;  %s456_s22 = scalar_lea.sflag [#allocation6], %s455_s24 }
  0x5b   : > { %s2542_s14 = scalar_lea.vmem [#allocation5], %s1704_s5 }
  0x5c   : > { %2195 = dma.done.wait (%p2388_p7), %s456_s22, 144  }
  0x5d   : > { %2197 = vsyncadd (%p2388_p7), %s456_s22, 4294967152  ;;  %s468_s29 = scalar_lea.vmem [#allocation7], %s2539_s8  ;;  %s475_s27 = scalar_lea.sflag [#allocation9], %s455_s24 }
  0x5e   : > { %s477_s1 = scalar_lea.vmem [#allocation8], %s2539_s8 }
  0x5f   : > { %2199 = dma.done.wait (%p2388_p7), %s475_s27, 4112  }
  0x60   : > { %2201 = vsyncadd (%p2388_p7), %s475_s27, 4294963184  ;;  %s1705_s16 = sshll.u32 %s2539_s8, 8  ;;  %s1706_s11 = sshll.u32 %s2539_s8, 1 }
  0x61   : > { %s2556_s30 = scalar_lea.vmem [#allocation10], %s1705_s16  ;;  %s494_s25 = scalar_lea.sflag [#allocation12], %s455_s24 }
  0x62   : > { %s2558_s7 = scalar_lea.vmem [#allocation11], %s1706_s11 }
  0x63   : > { %2203 = dma.done.wait (%p2388_p7), %s494_s25, 4128  }
  0x64   : > { %2205 = vsyncadd (%p2388_p7), %s494_s25, 4294963168  ;;  %s3387_s20 = sld [smem:[#allocation23_spill]]  ;;  %s2572_s22 = scalar_lea.vmem [#allocation13], %s1705_s16 }
  0x65   : > { %s3388_s3 = sld [smem:[#allocation35_spill]]  ;;  %s2574_s24 = scalar_lea.vmem [#allocation14], %s1703_s10 }
  0x6a   : > { %p572_p9 = scmp.lt.s32.totalorder %s3387_s20, 2  ;;  %p1709_p12 = scmp.ne.s32.totalorder %s3387_s20, 0 }
  0x6c   : > { %s2566_s21 = scalar_select %p572_p9, %s3387_s20, 2 }
  0x6d   : > { %578 = sbr.rel (%p1709_p12) target bundleno = 119 (0x77), region = 84 }
  0x6e   : > { %s574_s5 = scalar_lea.vmem %s3388_s3, %s2566_s21 }
  0x72   : > { %v579_v0 = vld [vmem:[%s2531_s26] sm:$0xff]  ;;  %v580_v1 = vld [vmem:[%s2531_s26 + $0x8] sm:$0xff]  ;;  %v581_v2 = vld [vmem:[%s2531_s26 + $0x10] sm:$0xff] }
  0x73   : > { %583 = vst [vmem:[%s2574_s24] sm:$0xff] %v579_v0  ;;  %v582_v3 = vld [vmem:[%s2531_s26 + $0x18] sm:$0xff] }
  0x74   : > { %584 = vst [vmem:[%s2574_s24 + $0x8] sm:$0xff] %v580_v1 }
  0x75   : > { %585 = vst [vmem:[%s2574_s24 + $0x10] sm:$0xff] %v581_v2 }
  0x76   : > { %586 = vst [vmem:[%s2574_s24 + $0x18] sm:$0xff] %v582_v3 }
  0x77 PF: > { %v595_v6 = vlaneseq  ;;  %v674_v16 = vld [vmem:[%s2542_s14] sm:$0x7f]  ;;  %s3402_s8 = sld [smem:[#allocation24_spill]]  ;;  %s1468_s11 = sshll.u32 %s2574_s24, 4  ;;  %s1469_s11 = int_to_ptr.vmem [resolvable:$true] %s1468_s11 }
  0x78   : > { %v2638_v26 = vperm.slane %v674_v16, 0  ;;  %v2641_v27 = vperm.slane %v674_v16, 1  ;;  %v2643_v28 = vperm.slane %v674_v16, 2  ;;  %v2645_v29 = vperm.slane %v674_v16, 3  ;;  %s1456_s25 = scalar_lea.sflag [#allocation4], %s2527_s0 }
  0x79   : > { %v2598_v12 = vshrl.u32 %v595_v6, 7  ;;  %v2657_v33 = vperm.slane %v674_v16, 4  ;;  %v2659_v34 = vperm.slane %v674_v16, 5  ;;  %v2672_v40 = vperm.slane %v674_v16, 6 }
  0x7a   : > { %v2648_v30 = vld [vmem:[%s2574_s24] sm:$0xff] }
  0x7b   : > { %v2586_v4 = vld [vmem:[%s2574_s24 + $0x8] sm:$0xff]  ;;  %vm597_vm0 = vcmp.lt.s32.totalorder %v2598_v12, 3  ;;  %vm606_vm1 = vcmp.lt.s32.totalorder %v2598_v12, 2  ;;  %vm615_vm2 = vcmp.lt.s32.totalorder %v2598_v12, 1  ;;  %vm624_vm3 = vcmp.lt.s32.totalorder %v2598_v12, 7 }
  0x7c   : > { %v2589_v5 = vld [vmem:[%s2574_s24 + $0x10] sm:$0xff]  ;;  %v592_v8 = vrot.slane %v2586_v4, 5  ;;  %v603_v10 = vrot.slane %v2586_v4, 6  ;;  %v612_v13 = vrot.slane %v2586_v4, 7  ;;  %vm633_vm4 = vcmp.lt.s32.totalorder %v2598_v12, 6 }
  0x7d   : > { %v2592_v7 = vld [vmem:[%s2574_s24 + $0x18] sm:$0xff]  ;;  %v593_v9 = vrot.slane %v2589_v5, 5  ;;  %v604_v11 = vrot.slane %v2589_v5, 6  ;;  %v613_v14 = vrot.slane %v2589_v5, 7  ;;  %v622_v15 = vrot.slane %v2589_v5, 1  ;;  %s1718_s14 = sshll.u32 %s3402_s8, 5 }
  0x7e   : > { %v623_v17 = vrot.slane %v2592_v7, 1  ;;  %v631_v18 = vrot.slane %v2589_v5, 2  ;;  %v632_v19 = vrot.slane %v2592_v7, 2  ;;  %v640_v20 = vrot.slane %v2589_v5, 3 }
  0x7f   : > { %v599_v21 = vsel %vm597_vm0, %v592_v8, %v593_v9  ;;  %v608_v22 = vsel %vm606_vm1, %v603_v10, %v604_v11  ;;  %v617_v23 = vsel %vm615_vm2, %v612_v13, %v613_v14  ;;  %v641_v25 = vrot.slane %v2592_v7, 3 }
  0x80   : > { %v625_v24 = vsel %vm624_vm3, %v622_v15, %v623_v17  ;;  %vm642_vm5 = vcmp.lt.s32.totalorder %v2598_v12, 5  ;;  %v634_v31 = vsel %vm633_vm4, %v631_v18, %v632_v19  ;;  %v714_v32 = vmul.f32 %v2638_v26, %v599_v21 }
  0x81   : > { %v643_v35 = vsel %vm642_vm5, %v640_v20, %v641_v25  ;;  %v731_v36 = vmul.f32 %v2641_v27, %v608_v22  ;;  %v744_v37 = vmul.f32 %v2643_v28, %v617_v23  ;;  %v753_v38 = vmul.f32 %v2645_v29, %v2589_v5 }
  0x82   : > { %v774_v39 = vmul.f32 %v2657_v33, %v625_v24  ;;  %v591_v41 = vrot.slane %v2648_v30, 5  ;;  %v594_v42 = vrot.slane %v2592_v7, 5  ;;  %v799_v44 = vmul.f32 %v2659_v34, %v634_v31 }
  0x83   : > { %v735_v43 = vadd.f32 %v731_v36, %v714_v32  ;;  %v602_v45 = vrot.slane %v2648_v30, 6  ;;  %v605_v46 = vrot.slane %v2592_v7, 6  ;;  %v611_v48 = vrot.slane %v2648_v30, 7 }
  0x84   : > { %v601_v47 = vsel %vm597_vm0, %v594_v42, %v591_v41  ;;  %v614_v49 = vrot.slane %v2592_v7, 7  ;;  %v620_v50 = vrot.slane %v2648_v30, 1  ;;  %v621_v53 = vrot.slane %v2586_v4, 1 }
  0x85   : > { %v748_v51 = vadd.f32 %v744_v37, %v735_v43  ;;  %v610_v52 = vsel %vm606_vm1, %v605_v46, %v602_v45  ;;  %v629_v54 = vrot.slane %v2648_v30, 2  ;;  %v630_v56 = vrot.slane %v2586_v4, 2 }
  0x86   : > { %v619_v55 = vsel %vm615_vm2, %v614_v49, %v611_v48  ;;  %v638_v57 = vrot.slane %v2648_v30, 3  ;;  %v639_v58 = vrot.slane %v2586_v4, 3  ;;  %v627_v60 = vsel %vm624_vm3, %v620_v50, %v621_v53 }
  0x87   : > { %v757_v59 = vadd.f32 %v753_v38, %v748_v51  ;;  %vm650_vm6 = vcmp.eq.s32.totalorder %v2598_v12, 0  ;;  %vm654_vm7 = vcmp.eq.s32.totalorder %v2598_v12, 1  ;;  %v636_v61 = vsel %vm633_vm4, %v629_v54, %v630_v56 }
  0x88   : > { %v645_v62 = vsel %vm642_vm5, %v638_v57, %v639_v58  ;;  %vm658_vm8 = vcmp.eq.s32.totalorder %v2598_v12, 2  ;;  %v737_v63 = vsel %vm650_vm6, %v627_v60, %v619_v55  ;;  %v828_v1 = vmul.f32 %v2672_v40, %v643_v35 }
  0x89   : > { %v778_v0 = vadd.f32 %v774_v39, %v757_v59  ;;  %v683_v2 = vsel %vm650_vm6, %v645_v62, %v601_v47  ;;  %v720_v3 = vsel %vm650_vm6, %v636_v61, %v610_v52  ;;  %v742_v21 = vmul.f32 %v2643_v28, %v737_v63 }
  0x8a   : > { %v695_v6 = vsel %vm654_vm7, %v627_v60, %v683_v2  ;;  %v724_v16 = vsel %vm654_vm7, %v2648_v30, %v720_v3  ;;  %v751_v31 = vmul.f32 %v2645_v29, %v2648_v30  ;;  %v772_v36 = vmul.f32 %v2657_v33, %v627_v60 }
  0x8b   : > { %v803_v22 = vadd.f32 %v799_v44, %v778_v0  ;;  %v707_v23 = vsel %vm658_vm8, %v619_v55, %v695_v6  ;;  %v729_v24 = vmul.f32 %v2641_v27, %v724_v16  ;;  %v598_v35 = vsel %vm597_vm0, %v593_v9, %v594_v42 }
  0x8c   : > { %v712_v32 = vmul.f32 %v2638_v26, %v707_v23  ;;  %v607_v37 = vsel %vm606_vm1, %v604_v11, %v605_v46  ;;  %v616_v39 = vsel %vm615_vm2, %v613_v14, %v614_v49  ;;  %v628_v43 = vsel %vm624_vm3, %v623_v17, %v620_v50 }
  0x8d   : > { %v2730_v38 = vadd.f32 %v828_v1, %v803_v22  ;;  %v637_v9 = vsel %vm633_vm4, %v632_v19, %v629_v54  ;;  %v646_v11 = vsel %vm642_vm5, %v641_v25, %v638_v57  ;;  %v649_v44 = vadd.s32 24, %v2598_v12 }
  0x8e   : > { %v733_v42 = vadd.f32 %v729_v24, %v712_v32  ;;  %v715_v14 = vmul.f32 %v2638_v26, %v598_v35  ;;  %v797_v46 = vmul.f32 %v2659_v34, %v636_v61  ;;  %v732_v17 = vmul.f32 %v2641_v27, %v607_v37 }
  0x8f   : > { %840 = vadd.xlane.f32.xlu1 %v2730_v38  ;;  %v745_v47 = vmul.f32 %v2643_v28, %v616_v39  ;;  %v754_v19 = vmul.f32 %v2645_v29, %v2592_v7  ;;  %vm665_vm9 = vcmp.eq.s32.totalorder %v649_v44, 31  ;;  %vm669_vm10 = vcmp.eq.s32.totalorder %v649_v44, 30 }
  0x90   : > { %v746_v49 = vadd.f32 %v742_v21, %v733_v42  ;;  %vm673_vm11 = vcmp.eq.s32.totalorder %v649_v44, 29  ;;  %v736_v25 = vadd.f32 %v732_v17, %v715_v14  ;;  %v770_v50 = vsel %vm665_vm9, %v616_v39, %v628_v43 }
  0x91   : > { %v783_v51 = vsel %vm665_vm9, %v607_v37, %v637_v9  ;;  %v808_v52 = vsel %vm665_vm9, %v598_v35, %v646_v11  ;;  %v600_v59 = vsel %vm597_vm0, %v591_v41, %v592_v8  ;;  %v775_v61 = vmul.f32 %v2657_v33, %v770_v50  ;;  %v966_v50 = vld [vmem:[%s2556_s30 + $0xe8] sm:$0xff] }
  0x92   : > { %v755_v54 = vadd.f32 %v751_v31, %v746_v49  ;;  %v795_v55 = vsel %vm669_vm10, %v2592_v7, %v783_v51  ;;  %v812_v57 = vsel %vm669_vm10, %v616_v39, %v808_v52  ;;  %v749_v60 = vadd.f32 %v745_v47, %v736_v25  ;;  %v968_v49 = vld [vmem:[%s2556_s30 + $0xf8] sm:$0xff]  ;;  %v965_v25 = vld [vmem:[%s2556_s30 + $0xe0] sm:$0xff]  ;;  %v963_v51 = vld [vmem:[%s2556_s30 + $0xd0] sm:$0xff] }
  0x93   : > { %v609_v63 = vsel %vm606_vm1, %v602_v45, %v603_v10  ;;  %v826_v7 = vmul.f32 %v2672_v40, %v645_v62  ;;  %v824_v1 = vsel %vm673_vm11, %v628_v43, %v812_v57  ;;  %v618_v8 = vsel %vm615_vm2, %v611_v48, %v612_v13  ;;  %1004 = vmatpush.msra.mxu1 %v968_v49  ;;  %v964_v52 = vld [vmem:[%s2556_s30 + $0xd8] sm:$0xff]  ;;  %v959_v57 = vld [vmem:[%s2556_s30 + $0xb0] sm:$0xff] }
  0x94   : > { %v776_v0 = vadd.f32 %v772_v36, %v755_v54  ;;  %v758_v41 = vadd.f32 %v754_v19, %v749_v60  ;;  %v800_v2 = vmul.f32 %v2659_v34, %v795_v55  ;;  %v713_v3 = vmul.f32 %v2638_v26, %v600_v59  ;;  %v967_v19 = vld [vmem:[%s2556_s30 + $0xf0] sm:$0xff]  ;;  %v961_v54 = vld [vmem:[%s2556_s30 + $0xc0] sm:$0xff]  ;;  %v962_v55 = vld [vmem:[%s2556_s30 + $0xc8] sm:$0xff] }
  0x95   : > { %v730_v16 = vmul.f32 %v2641_v27, %v609_v63  ;;  %v743_v10 = vmul.f32 %v2643_v28, %v618_v8  ;;  %v829_v62 = vmul.f32 %v2672_v40, %v824_v1  ;;  %v626_v13 = vsel %vm624_vm3, %v621_v53, %v622_v15  ;;  %975 = vmatpush.msra.mxu0 %v967_v19  ;;  %v960_v59 = vld [vmem:[%s2556_s30 + $0xb8] sm:$0xff]  ;;  %v957_v60 = vld [vmem:[%s2556_s30 + $0xa0] sm:$0xff]  ;;  %v955_v63 = vld [vmem:[%s2556_s30 + $0x90] sm:$0xff] }
  0x96   : > { %v801_v6 = vadd.f32 %v797_v46, %v776_v0  ;;  %v779_v45 = vadd.f32 %v775_v61, %v758_v41  ;;  %v752_v26 = vmul.f32 %v2645_v29, %v2586_v4  ;;  %v635_v27 = vsel %vm633_vm4, %v630_v56, %v631_v18  ;;  %1005 = vmatpush.msra.mxu1 %v966_v50  ;;  %v958_v61 = vld [vmem:[%s2556_s30 + $0xa8] sm:$0xff]  ;;  %v956_v0 = vld [vmem:[%s2556_s30 + $0x98] sm:$0xff]  ;;  %v951_v8 = vld [vmem:[%s2556_s30 + $0x70] sm:$0xff] }
  0x97   : > { %v734_v48 = vadd.f32 %v730_v16, %v713_v3  ;;  %v773_v22 = vmul.f32 %v2657_v33, %v626_v13  ;;  %v644_v15 = vsel %vm642_vm5, %v639_v58, %v640_v20  ;;  %v798_v53 = vmul.f32 %v2659_v34, %v635_v27  ;;  %976 = vmatpush.msra.mxu0 %v965_v25  ;;  %v954_v1 = vld [vmem:[%s2556_s30 + $0x88] sm:$0xff]  ;;  %v952_v41 = vld [vmem:[%s2556_s30 + $0x78] sm:$0xff] }
  0x98   : > { %v830_v30 = vadd.f32 %v826_v7, %v801_v6  ;;  %v804_v21 = vadd.f32 %v800_v2, %v779_v45  ;;  %v827_v31 = vmul.f32 %v2672_v40, %v644_v15  ;;  %v2258_v32 = vmov 128.0   ;;  %1006 = vmatpush.msra.mxu1 %v964_v52  ;;  %v953_v7 = vld [vmem:[%s2556_s30 + $0x80] sm:$0xff]  ;;  %v950_v3 = vld [vmem:[%s2556_s30 + $0x68] sm:$0xff]  ;;  %v947_v6 = vld [vmem:[%s2556_s30 + $0x50] sm:$0xff] }
  0x99   : > { %v747_v28 = vadd.f32 %v743_v10, %v734_v48  ;;  %1862 = vrcp.f32 %v2258_v32  ;;  %977 = vmatpush.msra.mxu0 %v963_v51  ;;  %v949_v2 = vld [vmem:[%s2556_s30 + $0x60] sm:$0xff]  ;;  %v948_v16 = vld [vmem:[%s2556_s30 + $0x58] sm:$0xff]  ;;  %v946_v45 = vld [vmem:[%s2556_s30 + $0x48] sm:$0xff] }
  0x9a   : > { %836 = vadd.xlane.f32.xlu0 %v830_v30  ;;  %v833_v23 = vadd.f32 %v829_v62, %v804_v21  ;;  %1007 = vmatpush.msra.mxu1 %v962_v55  ;;  %v945_v10 = vld [vmem:[%s2556_s30 + $0x40] sm:$0xff]  ;;  %v943_v62 = vld [vmem:[%s2556_s30 + $0x30] sm:$0xff]  ;;  %v944_v13 = vld [vmem:[%s2556_s30 + $0x38] sm:$0xff] }
  0x9b   : > { %v756_v29 = vadd.f32 %v752_v26, %v747_v28  ;;  %978 = vmatpush.msra.mxu0 %v961_v54  ;;  %v941_v48 = vld [vmem:[%s2556_s30 + $0x20] sm:$0xff]  ;;  %v942_v26 = vld [vmem:[%s2556_s30 + $0x28] sm:$0xff]  ;;  %v939_v21 = vld [vmem:[%s2556_s30 + $0x10] sm:$0xff] }
  0x9c   : > { %842 = vadd.xlane.f32.xlu1 %v833_v23  ;;  %1008 = vmatpush.msra.mxu1 %v960_v59  ;;  %v940_v27 = vld [vmem:[%s2556_s30 + $0x18] sm:$0xff]  ;;  %v1859_v19 = vld [vmem:[%s468_s29] ss:$0 sm:$0xff] }
  0x9d   : > { %v777_v24 = vadd.f32 %v773_v22, %v756_v29  ;;  %979 = vmatpush.msra.mxu0 %v959_v57  ;;  %v937_v22 = vld [vmem:[%s2556_s30] sm:$0xff]  ;;  %v1860_v50 = vld [vmem:[%s477_s1] ss:$0 sm:$0xff]  ;;  %s3403_s1 = sld [smem:[#allocation36_spill]] }
  0x9e   : > { %1009 = vmatpush.msra.mxu1 %v958_v61 }
  0x9f   : > { %v802_v18 = vadd.f32 %v798_v53, %v777_v24  ;;  %v1863_v33 = vpop.eup %1862  ;;  %980 = vmatpush.msra.mxu0 %v957_v60 }
  0xa0   : > { %v845_v36 = vmul.f32 128.0, %v1863_v33  ;;  %vm849_vm12 = vweird.f32 %v1863_v33  ;;  %1010 = vmatpush.msra.mxu1 %v956_v0 }
  0xa1   : > { %v831_v56 = vadd.f32 %v827_v31, %v802_v18  ;;  %981 = vmatpush.msra.mxu0 %v955_v63 }
  0xa2   : > { %v846_v5 = vsub.f32 1.0, %v845_v36  ;;  %1011 = vmatpush.msra.mxu1 %v954_v1 }
  0xa3   : > { %838 = vadd.xlane.f32.xlu0 %v831_v56  ;;  %982 = vmatpush.msra.mxu0 %v953_v7  ;;  %s1467_s16 = scalar_lea.hbm %s3403_s1, %s1718_s14  ;;  %s2138_s17 = scalar_lea.hbm %s3403_s1, 64 }
  0xa4   : > { %v847_v35 = vmul.f32 %v1863_v33, %v846_v5  ;;  %1012 = vmatpush.msra.mxu1 %v952_v41 }
  0xa5   : > { %983 = vmatpush.msra.mxu0 %v951_v8 }
  0xa6   : > { %v848_v4 = vadd.f32 %v1863_v33, %v847_v35  ;;  %1013 = vmatpush.msra.mxu1 %v950_v3 }
  0xa7   : > { %984 = vmatpush.msra.mxu0 %v949_v2 }
  0xa8   : > { %v2805_v12 = vsel %vm849_vm12, %v1863_v33, %v848_v4  ;;  %1014 = vmatpush.msra.mxu1 %v948_v16 }
  0xa9   : > { %985 = vmatpush.msra.mxu0 %v947_v6 }
  0xaa   : > { %1015 = vmatpush.msra.mxu1 %v946_v45 }
  0xab   : > { %986 = vmatpush.msra.mxu0 %v945_v10 }
  0xac   : > { %1016 = vmatpush.msra.mxu1 %v944_v13 }
  0xad   : > { %987 = vmatpush.msra.mxu0 %v943_v62 }
  0xae   : > { %1017 = vmatpush.msra.mxu1 %v942_v26 }
  0xaf   : > { %988 = vmatpush.msra.mxu0 %v941_v48  ;;  %v1384_v48 = vld [vmem:[%s2572_s22 + $0xf8] sm:$0xff] }
  0xb0   : > { %1018 = vmatpush.msra.mxu1 %v940_v27  ;;  %1418 = vmatpush.msra.mxu3 %v1384_v48  ;;  %v1383_v27 = vld [vmem:[%s2572_s22 + $0xf0] sm:$0xff] }
  0xb1   : > { %989 = vmatpush.msra.mxu0 %v939_v21  ;;  %v1367_v21 = vld [vmem:[%s2572_s22 + $0x70] sm:$0xff] }
  0xb2   : > { %1419 = vmatpush.msra.mxu3 %v1383_v27 }
  0xb3   : > { %990 = vmatpush.msra.mxu0 %v937_v22 }
 0x102   : > { %v841_v20 = vpop.xlane.xlu1 %840 }
 0x103   : > { %v853_v34 = vmul.f32 %v2805_v12, %v841_v20 }
 0x105   : > { %v2809_v58 = vsub.f32 %v2730_v38, %v853_v34 }
 0x107   : > { %v861_v40 = vmul.f32 %v2809_v58, %v2809_v58 }
 0x109   : > { %867 = vadd.xlane.f32.xlu0 %v861_v40 }
 0x10d   : > { %v837_v37 = vpop.xlane.xlu0 %836 }
 0x10e   : > { %v851_v39 = vmul.f32 %v2805_v12, %v837_v37 }
 0x10f   : > { %v843_v43 = vpop.xlane.xlu1 %842 }
 0x110   : > { %v2814_v9 = vsub.f32 %v830_v30, %v851_v39  ;;  %v854_v42 = vmul.f32 %v2805_v12, %v843_v43 }
 0x112   : > { %v859_v38 = vmul.f32 %v2814_v9, %v2814_v9  ;;  %v2819_v11 = vsub.f32 %v833_v23, %v854_v42  ;;  %v938_v23 = vld [vmem:[%s2556_s30 + $0x8] sm:$0xff]  ;;  %s1470_s30 = sshll.u32 %s1467_s16, 4  ;;  %s1471_s30 = int_to_ptr.hbm [resolvable:$true] %s1470_s30 }
 0x113   : > { %1019 = vmatpush.msra.mxu1 %v938_v23  ;;  %v1366_v23 = vld [vmem:[%s2572_s22 + $0x68] sm:$0xff] }
 0x114   : > { %863 = vadd.xlane.f32.xlu2 %v859_v38  ;;  %v862_v44 = vmul.f32 %v2819_v11, %v2819_v11 }
 0x116   : > { %v839_v14 = vpop.xlane.xlu0 %838  ;;  %869 = vadd.xlane.f32.xlu1 %v862_v44 }
 0x117   : > { %v852_v46 = vmul.f32 %v2805_v12, %v839_v14 }
 0x119   : > { %v2824_v17 = vsub.f32 %v831_v56, %v852_v46 }
 0x11b   : > { %v860_v47 = vmul.f32 %v2824_v17, %v2824_v17 }
 0x11d   : > { %865 = vadd.xlane.f32.xlu2 %v860_v47 }
 0x17c   : > { %v868_v30 = vpop.xlane.xlu0 %867 }
 0x17d   : > { %v873_v28 = vmul.f32 %v868_v30, %v2805_v12  ;;  %v1368_v30 = vld [vmem:[%s2572_s22 + $0x78] sm:$0xff] }
 0x17e   : > { %1389 = vmatpush.msra.mxu2 %v1368_v30 }
 0x17f   : > { %v877_v15 = vadd.f32 1e-05, %v873_v28 }
 0x180   : > { %1390 = vmatpush.msra.mxu2 %v1367_v21  ;;  %v2259_v21 = vmov -1.0  }
 0x181   : > { %1864 = vrsqrt.f32 %v877_v15  ;;  %vm905_vm0 = vweird.f32 %v877_v15 }
 0x182   : > { %1391 = vmatpush.msra.mxu2 %v1366_v23 }
 0x187   : > { %v864_v29 = vpop.xlane.xlu2 %863  ;;  %v1865_v32 = vpop.eup %1864 }
 0x188   : > { %v871_v53 = vmul.f32 %v864_v29, %v2805_v12  ;;  %v900_v20 = vmul.f32 %v1865_v32, %v877_v15  ;;  %vm906_vm1 = vweird.f32 %v1865_v32  ;;  %v1382_v15 = vld [vmem:[%s2572_s22 + $0xe8] sm:$0xff] }
 0x189   : > { %v870_v31 = vpop.xlane.xlu1 %869  ;;  %vm907_vm3 = vmor %vm905_vm0, %vm906_vm1  ;;  %1420 = vmatpush.msra.mxu3 %v1382_v15 }
 0x18a   : > { %v875_v24 = vadd.f32 1e-05, %v871_v53  ;;  %v874_v18 = vmul.f32 %v870_v31, %v2805_v12  ;;  %v901_v37 = vmul.f32 %v1865_v32, %v900_v20  ;;  %v1381_v31 = vld [vmem:[%s2572_s22 + $0xe0] sm:$0xff] }
 0x18b   : > { %1421 = vmatpush.msra.mxu3 %v1381_v31 }
 0x18c   : > { %1866 = vrsqrt.f32 %v875_v24  ;;  %v878_v56 = vadd.f32 1e-05, %v874_v18  ;;  %vm885_vm14 = vweird.f32 %v875_v24  ;;  %v902_v44 = vmul.f32 0.5, %v901_v37 }
 0x18e   : > { %1868 = vrsqrt.f32 %v878_v56  ;;  %v903_v51 = vsub.f32 1.5, %v902_v44  ;;  %vm915_vm6 = vweird.f32 %v878_v56 }
 0x190   : > { %v866_v33 = vpop.xlane.xlu2 %865  ;;  %v904_v59 = vmul.f32 %v1865_v32, %v903_v51 }
 0x191   : > { %v872_v5 = vmul.f32 %v866_v33, %v2805_v12  ;;  %v1380_v33 = vld [vmem:[%s2572_s22 + $0xd8] sm:$0xff] }
 0x192   : > { %v1867_v36 = vpop.eup %1866  ;;  %v908_v7 = vsel %vm907_vm3, %v1865_v32, %v904_v59  ;;  %v1364_v32 = vld [vmem:[%s2572_s22 + $0x58] sm:$0xff]  ;;  %1422 = vmatpush.msra.mxu3 %v1380_v33 }
 0x193   : > { %v880_v35 = vmul.f32 %v1867_v36, %v875_v24  ;;  %v876_v4 = vadd.f32 1e-05, %v872_v5  ;;  %vm886_vm13 = vweird.f32 %v1867_v36  ;;  %v921_v41 = vmul.f32 %v908_v7, %v2809_v58  ;;  %v969_v58 = vld [vmem:[%s2558_s7] sm:$0x3]  ;;  %v1365_v24 = vld [vmem:[%s2572_s22 + $0x60] sm:$0xff]  ;;  %s2132_s7 = sshra.s32 %s1471_s30, 4  ;;  %s2133_s7 = int_to_ptr.hbm [resolvable:$true] %s2132_s7 }
 0x194   : > { %v1869_v43 = vpop.eup %1868  ;;  %vm887_vm15 = vmor %vm885_vm14, %vm886_vm13  ;;  %v2873_v62 = vperm.slane %v969_v58, 0  ;;  %v2875_v13 = vperm.slane %v969_v58, 1  ;;  %1392 = vmatpush.msra.mxu2 %v1365_v24  ;;  %v1355_v24 = vld [vmem:[%s2572_s22 + $0x10] sm:$0xff]  ;;  %s2134_s20 = scalar_lea.hbm %s2133_s7, 32  ;;  %p2139_p5 = scmp.lt.s32.totalorder %s2133_s7, %s3403_s1 }
 0x195   : > { %v881_v34 = vmul.f32 %v1867_v36, %v880_v35  ;;  %1870 = vrsqrt.f32 %v876_v4  ;;  %v910_v14 = vmul.f32 %v1869_v43, %v878_v56  ;;  %vm895_vm4 = vweird.f32 %v876_v4  ;;  %v1363_v35 = vld [vmem:[%s2572_s22 + $0x50] sm:$0xff]  ;;  %p2135_p7 = scmp.ne.s32.totalorder %s2133_s7, %s2134_s20  ;;  %p2140_p6 = scmp.lt.s32.totalorder %s2138_s17, %s2134_s20 }
 0x196   : > { %vm916_vm7 = vweird.f32 %v1869_v43  ;;  %v928_v3 = vmul.f32 %v1859_v19, %v921_v41  ;;  %1393 = vmatpush.msra.mxu2 %v1364_v32  ;;  %v1358_v41 = vld [vmem:[%s2572_s22 + $0x28] sm:$0xff] }
 0x197   : > { %v882_v40 = vmul.f32 0.5, %v881_v34  ;;  %v911_v52 = vmul.f32 %v1869_v43, %v910_v14  ;;  %vm917_vm8 = vmor %vm915_vm6, %vm916_vm7  ;;  %v1361_v14 = vld [vmem:[%s2572_s22 + $0x40] sm:$0xff]  ;;  %p2136_p3 = pnand %p2135_p7, %p2471_p0  ;;  %p2141_p10 = por %p2140_p6, %p2139_p5 }
 0x198   : > { %v935_v16 = vadd.f32 %v1860_v50, %v928_v3  ;;  %1394 = vmatpush.msra.mxu2 %v1363_v35  ;;  %v1357_v3 = vld [vmem:[%s2572_s22 + $0x20] sm:$0xff] }
 0x199   : > { %v883_v39 = vsub.f32 1.5, %v882_v40  ;;  %v912_v60 = vmul.f32 0.5, %v911_v52  ;;  %p2137_p4 = pneg %p2136_p3 }
 0x19b   : > { %v884_v42 = vmul.f32 %v1867_v36, %v883_v39  ;;  %v1871_v38 = vpop.eup %1870  ;;  %v913_v0 = vsub.f32 1.5, %v912_v60  ;;  %v1362_v39 = vld [vmem:[%s2572_s22 + $0x48] sm:$0xff]  ;;  %p2142_p1 = pnand %p2141_p10, %p2137_p4 }
 0x19c   : > { %v890_v12 = vmul.f32 %v1871_v38, %v876_v4  ;;  %vm896_vm2 = vweird.f32 %v1871_v38  ;;  %v1379_v4 = vld [vmem:[%s2572_s22 + $0xd0] sm:$0xff]  ;;  %1395 = vmatpush.msra.mxu2 %v1362_v39 }
 0x19d   : > { %v888_v46 = vsel %vm887_vm15, %v1867_v36, %v884_v42  ;;  %vm897_vm5 = vmor %vm895_vm4, %vm896_vm2  ;;  %v914_v2 = vmul.f32 %v1869_v43, %v913_v0  ;;  %1423 = vmatpush.msra.mxu3 %v1379_v4 }
 0x19e   : > { %v919_v47 = vmul.f32 %v888_v46, %v2814_v9  ;;  %v891_v49 = vmul.f32 %v1871_v38, %v890_v12  ;;  %v1377_v12 = vld [vmem:[%s2572_s22 + $0xc0] sm:$0xff]  ;;  %1396 = vmatpush.msra.mxu2 %v1361_v14 }
 0x19f   : > { %v918_v6 = vsel %vm917_vm8, %v1869_v43, %v914_v2  ;;  %v1378_v43 = vld [vmem:[%s2572_s22 + $0xc8] sm:$0xff]  ;;  %v1369_v14 = vld [vmem:[%s2572_s22 + $0x80] sm:$0xff] }
 0x1a0   : > { %v926_v25 = vmul.f32 %v1859_v19, %v919_v47  ;;  %v892_v54 = vmul.f32 0.5, %v891_v49  ;;  %1424 = vmatpush.msra.mxu3 %v1378_v43  ;;  %v1360_v49 = vld [vmem:[%s2572_s22 + $0x38] sm:$0xff]  ;;  %v1374_v2 = vld [vmem:[%s2572_s22 + $0xa8] sm:$0xff] }
 0x1a1   : > { %1397 = vmatpush.msra.mxu2 %v1360_v49 }
 0x1a2   : > { %v933_v55 = vadd.f32 %v1860_v50, %v926_v25  ;;  %v893_v57 = vsub.f32 1.5, %v892_v54  ;;  %1425 = vmatpush.msra.mxu3 %v1377_v12  ;;  %v1376_v25 = vld [vmem:[%s2572_s22 + $0xb8] sm:$0xff] }
 0x1a4   : > { %991 = vmatmul.f32.vlgmr.msra.gmra.mxu0 %v933_v55  ;;  %1020 = vmatmul.f32.vlgmr.msra.gmra.mxu1 %v933_v55  ;;  %v894_v9 = vmul.f32 %v1871_v38, %v893_v57  ;;  %v1359_v55 = vld [vmem:[%s2572_s22 + $0x30] sm:$0xff] }
 0x1a5   : > { %1426 = vmatpush.msra.mxu3 %v1376_v25  ;;  %v1375_v57 = vld [vmem:[%s2572_s22 + $0xb0] sm:$0xff]  ;;  %1398 = vmatpush.msra.mxu2 %v1359_v55 }
 0x1a6   : > { %v898_v61 = vsel %vm897_vm5, %v1871_v38, %v894_v9 }
 0x1a7   : > { %v920_v63 = vmul.f32 %v898_v61, %v2824_v17  ;;  %v922_v17 = vmul.f32 %v918_v6, %v2819_v11  ;;  %1427 = vmatpush.msra.mxu3 %v1375_v57  ;;  %1399 = vmatpush.msra.mxu2 %v1358_v41 }
 0x1a9   : > { %v927_v1 = vmul.f32 %v1859_v19, %v920_v63  ;;  %v929_v10 = vmul.f32 %v1859_v19, %v922_v17  ;;  %1428 = vmatpush.msra.mxu3 %v1374_v2  ;;  %1400 = vmatpush.msra.mxu2 %v1357_v3 }
 0x1ab   : > { %v934_v8 = vadd.f32 %v1860_v50, %v927_v1  ;;  %v936_v45 = vadd.f32 %v1860_v50, %v929_v10 }
 0x1ad   : > { %994 = vmatmul.f32.gmra.mxu0 %v934_v8  ;;  %1023 = vmatmul.f32.gmra.mxu1 %v934_v8 }
 0x1b5   : > { %997 = vmatmul.f32.gmra.mxu0 %v935_v16  ;;  %1026 = vmatmul.f32.gmra.mxu1 %v935_v16 }
 0x1bd   : > { %1000 = vmatmul.f32.gmra.mxu0 %v936_v45  ;;  %1029 = vmatmul.f32.gmra.mxu1 %v936_v45  ;;  %v1373_v45 = vld [vmem:[%s2572_s22 + $0xa0] sm:$0xff] }
 0x1be   : > { %1429 = vmatpush.msra.mxu3 %v1373_v45 }
 0x221   : > { %v992_v11 = vpop.f32.mrf.mxu0  ;;  %v1021_v26 = vpop.f32.mrf.mxu1 }
 0x222   : > { %v993_v28 = vadd.f32 %v992_v11, %v2873_v62  ;;  %v1022_v22 = vadd.f32 %v1021_v26, %v2875_v13  ;;  %v1356_v11 = vld [vmem:[%s2572_s22 + $0x18] sm:$0xff] }
 0x223   : > { %v1372_v26 = vld [vmem:[%s2572_s22 + $0x98] sm:$0xff]  ;;  %1401 = vmatpush.msra.mxu2 %v1356_v11 }
 0x224   : > { %v2885_v29 = vmul.f32 0.70710677, %v993_v28  ;;  %v2887_v53 = vmul.f32 0.70710677, %v1022_v22  ;;  %v2924_v52 = vmul.f32 0.5, %v993_v28  ;;  %v2934_v60 = vmul.f32 0.5, %v1022_v22  ;;  %1430 = vmatpush.msra.mxu3 %v1372_v26 }
 0x225   : > { %1402 = vmatpush.msra.mxu2 %v1355_v24 }
 0x226   : > { %v1065_v18 = vand.u32 2147483647, %v2885_v29  ;;  %v1066_v56 = vand.u32 2147483647, %v2887_v53  ;;  %vm1049_vm9 = vcmp.ge.f32.partialorder %v2885_v29, 0.0  ;;  %vm1050_vm10 = vcmp.ge.f32.partialorder %v2887_v53, 0.0 }
 0x227   : > { %v2964_v27 = vsel %vm1049_vm9, 1.0, %v2259_v21  ;;  %v2970_v23 = vsel %vm1050_vm10, 1.0, %v2259_v21  ;;  %v1371_v29 = vld [vmem:[%s2572_s22 + $0x90] sm:$0xff] }
 0x228   : > { %v1073_v36 = vmul.f32 0.3275911, %v1065_v18  ;;  %v1074_v5 = vmul.f32 0.3275911, %v1066_v56  ;;  %v1281_v42 = vsub.f32 0.0, %v1065_v18  ;;  %v1282_v46 = vsub.f32 0.0, %v1066_v56  ;;  %1431 = vmatpush.msra.mxu3 %v1371_v29 }
 0x22a   : > { %v2897_v20 = vadd.f32 1.0, %v1073_v36  ;;  %v2899_v34 = vadd.f32 1.0, %v1074_v5  ;;  %v995_v40 = vpop.f32.mrf.mxu0  ;;  %v1024_v37 = vpop.f32.mrf.mxu1  ;;  %v1289_v50 = vmul.f32 %v1281_v42, %v1065_v18  ;;  %v1290_v9 = vmul.f32 %v1282_v46, %v1066_v56  ;;  %v1354_v36 = vld [vmem:[%s2572_s22 + $0x8] sm:$0xff] }
 0x22b   : > { %v2905_v38 = vadd.f32 %v995_v40, %v2873_v62  ;;  %v2909_v44 = vadd.f32 %v1024_v37, %v2875_v13  ;;  %v1370_v5 = vld [vmem:[%s2572_s22 + $0x88] sm:$0xff]  ;;  %1403 = vmatpush.msra.mxu2 %v1354_v36 }
 0x22c   : > { %1872 = vrcp.f32 %v2897_v20  ;;  %v1297_v6 = vmul.f32 1.442695, %v1289_v50  ;;  %v1299_v22 = vmul.f32 1.442695, %v1290_v9  ;;  %vm1094_vm11 = vweird.f32 %v2897_v20  ;;  %1432 = vmatpush.msra.mxu3 %v1370_v5 }
 0x22d   : > { %1874 = vrcp.f32 %v2899_v34  ;;  %v2914_v47 = vmul.f32 0.70710677, %v2905_v38  ;;  %v2917_v19 = vmul.f32 0.70710677, %v2909_v44  ;;  %v1098_v31 = vand.u32 2147483647, %v2897_v20 }
 0x22e   : > { %v2985_v32 = vmul.f32 0.5, %v2905_v38  ;;  %v1100_v35 = vand.u32 2147483648, %v2897_v20  ;;  %v2995_v4 = vmul.f32 0.5, %v2909_v44  ;;  %v1353_v38 = vld [vmem:[%s2572_s22] sm:$0xff]  ;;  %1433 = vmatpush.msra.mxu3 %v1369_v14  ;;  %vm1109_vm1 = vweird.f32 %v2899_v34 }
 0x22f   : > { %v2922_v51 = vand.u32 2147483647, %v2914_v47  ;;  %v2927_v54 = vand.u32 2147483647, %v2917_v19  ;;  %vm3006_vm13 = vcmp.eq.f32.partialorder %v1098_v31, 8.507059e+37  ;;  %vm1051_vm14 = vcmp.ge.f32.partialorder %v2914_v47, 0.0  ;;  %1404 = vmatpush.msra.mxu2 %v1353_v38 }
 0x230   : > { %v1101_v45 = vor.u32 1.1754944e-38, %v1100_v35 }
 0x231   : > { %v1075_v61 = vmul.f32 0.3275911, %v2922_v51  ;;  %v1076_v7 = vmul.f32 0.3275911, %v2927_v54  ;;  %v1283_v18 = vsub.f32 0.0, %v2922_v51  ;;  %v1284_v25 = vsub.f32 0.0, %v2927_v54 }
 0x232   : > { %v2931_v59 = vpop.eup %1872  ;;  %v998_v1 = vpop.f32.mrf.mxu0 }
 0x233   : > { %v2937_v63 = vpop.eup %1874  ;;  %v1090_v0 = vmul.f32 %v2931_v59, %v2897_v20  ;;  %v1027_v8 = vpop.f32.mrf.mxu1  ;;  %v2948_v17 = vadd.f32 1.0, %v1075_v61  ;;  %v2951_v10 = vadd.f32 %v998_v1, %v2873_v62  ;;  %v2954_v30 = vadd.f32 1.0, %v1076_v7 }
 0x234   : > { %v1105_v16 = vmul.f32 %v2937_v63, %v2899_v34  ;;  %v2957_v48 = vadd.f32 %v1027_v8, %v2875_v13  ;;  %vm1095_vm12 = vweird.f32 %v2931_v59  ;;  %v1291_v49 = vmul.f32 %v1283_v18, %v2922_v51 }
 0x235   : > { %v1091_v58 = vsub.f32 1.0, %v1090_v0  ;;  %1876 = vrcp.f32 %v2948_v17  ;;  %v2973_v15 = vmul.f32 0.70710677, %v2951_v10  ;;  %v1115_v51 = vand.u32 2147483648, %v2899_v34  ;;  %vm3035_vm15 = vmor %vm1094_vm11, %vm1095_vm12 }
 0x236   : > { %v1106_v28 = vsub.f32 1.0, %v1105_v16  ;;  %1878 = vpow2.f32 %v1297_v6  ;;  %v2981_v56 = vmul.f32 0.70710677, %v2957_v48  ;;  %vm1110_vm0 = vweird.f32 %v2937_v63 }
 0x237   : > { %v1092_v53 = vmul.f32 %v2931_v59, %v1091_v58  ;;  %1880 = vrcp.f32 %v2954_v30  ;;  %v2989_v33 = vand.u32 2147483647, %v2973_v15  ;;  %v1301_v6 = vmul.f32 1.442695, %v1291_v49  ;;  %vm1111_vm2 = vmor %vm1109_vm1, %vm1110_vm0 }
 0x238   : > { %1882 = vpow2.f32 %v1299_v22  ;;  %v2998_v40 = vand.u32 2147483647, %v2981_v56  ;;  %v1107_v37 = vmul.f32 %v2937_v63, %v1106_v28  ;;  %v1292_v16 = vmul.f32 %v1284_v25, %v2927_v54 }
 0x239   : > { %v1077_v39 = vmul.f32 0.3275911, %v2989_v33  ;;  %v1093_v12 = vadd.f32 %v2931_v59, %v1092_v53  ;;  %v1285_v58 = vsub.f32 0.0, %v2989_v33  ;;  %v1116_v28 = vor.u32 1.1754944e-38, %v1115_v51 }
 0x23a   : > { %v1001_v43 = vpop.f32.mrf.mxu0  ;;  %v1078_v50 = vmul.f32 0.3275911, %v2998_v40  ;;  %v1108_v1 = vadd.f32 %v2937_v63, %v1107_v37  ;;  %v1303_v31 = vmul.f32 1.442695, %v1292_v16  ;;  %v3101_v25 = vsel %vm1051_vm14, 1.0, %v2259_v21 }
 0x23b   : > { %v1030_v42 = vpop.f32.mrf.mxu1  ;;  %v3010_v46 = vpop.eup %1876  ;;  %v3016_v55 = vadd.f32 %v1001_v43, %v2873_v62  ;;  %v3021_v9 = vadd.f32 1.0, %v1077_v39  ;;  %v1097_v20 = vsel %vm3035_vm15, %v2931_v59, %v1093_v12  ;;  %v1293_v5 = vmul.f32 %v1285_v58, %v2989_v33 }
 0x23c   : > { %v1120_v57 = vmul.f32 %v3010_v46, %v2948_v17  ;;  %v3024_v61 = vadd.f32 %v1030_v42, %v2875_v13  ;;  %v3027_v0 = vpop.eup %1878  ;;  %v3029_v7 = vadd.f32 1.0, %v1078_v50  ;;  %v1113_v13 = vand.u32 2147483647, %v2899_v34 }
 0x23d   : > { %v3042_v8 = vpop.eup %1880  ;;  %1884 = vrcp.f32 %v3021_v9  ;;  %v3046_v2 = vmul.f32 0.70710677, %v3016_v55  ;;  %v3069_v54 = vsel %vm3006_vm13, %v1101_v45, %v1097_v20  ;;  %v1112_v34 = vsel %vm1111_vm2, %v2937_v63, %v1108_v1 }
 0x23e   : > { %v1121_v41 = vsub.f32 1.0, %v1120_v57  ;;  %v3051_v3 = vpop.eup %1882  ;;  %1886 = vrcp.f32 %v3029_v7  ;;  %v3061_v26 = vmul.f32 0.70710677, %v3024_v61  ;;  %v1135_v59 = vmul.f32 %v3042_v8, %v2954_v30 }
 0x23f   : > { %v3058_v11 = vand.u32 2147483647, %v3046_v2  ;;  %vm1114_vm3 = vcmp.eq.f32.partialorder %v1113_v13, 8.507059e+37  ;;  %1888 = vpow2.f32 %v1301_v6  ;;  %v1209_v18 = vmul.f32 1.0614054, %v3069_v54 }
 0x240   : > { %v3074_v24 = vand.u32 2147483647, %v3061_v26  ;;  %v1122_v29 = vmul.f32 %v3010_v46, %v1121_v41  ;;  %v3078_v53 = vsel %vm1114_vm3, %v1116_v28, %v1112_v34  ;;  %v1286_v63 = vsub.f32 0.0, %v2998_v40 }
 0x241   : > { %v1079_v22 = vmul.f32 0.3275911, %v3058_v11  ;;  %v1136_v39 = vsub.f32 1.0, %v1135_v59  ;;  %v1217_v42 = vadd.f32 -1.4531521, %v1209_v18  ;;  %vm1125_vm4 = vweird.f32 %v3010_v46 }
 0x242   : > { %v1080_v37 = vmul.f32 0.3275911, %v3074_v24  ;;  %v1210_v38 = vmul.f32 1.0614054, %v3078_v53  ;;  %v1123_v33 = vadd.f32 %v3010_v46, %v1122_v29  ;;  %v1305_v50 = vmul.f32 1.442695, %v1293_v5 }
 0x243   : > { %v3080_v36 = vpop.eup %1884  ;;  %v3084_v35 = vadd.f32 1.0, %v1079_v22  ;;  %v1225_v44 = vmul.f32 %v1217_v42, %v3069_v54  ;;  %v1294_v57 = vmul.f32 %v1286_v63, %v2998_v40  ;;  %vm1124_vm5 = vweird.f32 %v2948_v17 }
 0x244   : > { %v1150_v43 = vmul.f32 %v3080_v36, %v3021_v9  ;;  %v3090_v14 = vpop.eup %1886  ;;  %v3093_v12 = vadd.f32 1.0, %v1080_v37  ;;  %v1218_v49 = vadd.f32 -1.4531521, %v1210_v38  ;;  %v1128_v51 = vand.u32 2147483647, %v2948_v17  ;;  %vm3111_vm6 = vmor %vm1124_vm5, %vm1125_vm4 }
 0x245   : > { %1890 = vrcp.f32 %v3084_v35  ;;  %v3106_v62 = vpop.eup %1888  ;;  %v1165_v13 = vmul.f32 %v3090_v14, %v3029_v7  ;;  %v1233_v41 = vadd.f32 1.4214138, %v1225_v44  ;;  %v1127_v40 = vsel %vm3111_vm6, %v3010_v46, %v1123_v33 }
 0x246   : > { %1892 = vpow2.f32 %v1303_v31  ;;  %v1151_v1 = vsub.f32 1.0, %v1150_v43  ;;  %v1226_v20 = vmul.f32 %v1218_v49, %v3078_v53  ;;  %v1130_v6 = vand.u32 2147483648, %v2948_v17 }
 0x247   : > { %1894 = vrcp.f32 %v3093_v12  ;;  %v1137_v16 = vmul.f32 %v3042_v8, %v1136_v39  ;;  %v1241_v45 = vmul.f32 %v1233_v41, %v3069_v54  ;;  %vm1129_vm7 = vcmp.eq.f32.partialorder %v1128_v51, 8.507059e+37 }
 0x248   : > { %v1234_v58 = vadd.f32 1.4214138, %v1226_v20  ;;  %vm1139_vm8 = vweird.f32 %v2954_v30  ;;  %v1131_v34 = vor.u32 1.1754944e-38, %v1130_v6  ;;  %vm1140_vm9 = vweird.f32 %v3042_v8 }
 0x249   : > { %v1138_v28 = vadd.f32 %v3042_v8, %v1137_v16  ;;  %v1143_v22 = vand.u32 2147483647, %v2954_v30  ;;  %v1249_v29 = vadd.f32 -0.28449672, %v1241_v45  ;;  %v1145_v18 = vand.u32 2147483648, %v2954_v30  ;;  %vm1141_vm10 = vmor %vm1139_vm8, %vm1140_vm9 }
 0x24a   : > { %v1242_v31 = vmul.f32 %v1234_v58, %v3078_v53  ;;  %1896 = vpow2.f32 %v1305_v50  ;;  %v1166_v5 = vsub.f32 1.0, %v1165_v13  ;;  %v3136_v63 = vmul.f32 1.442695, %v1294_v57 }
 0x24b   : > { %v3123_v59 = vpop.eup %1890  ;;  %v3138_v37 = vsel %vm1129_vm7, %v1131_v34, %v1127_v40  ;;  %v1257_v39 = vmul.f32 %v1249_v29, %v3069_v54  ;;  %v1142_v38 = vsel %vm1141_vm10, %v3042_v8, %v1138_v28  ;;  %vm1144_vm11 = vcmp.eq.f32.partialorder %v1143_v22, 8.507059e+37 }
 0x24c   : > { %v3128_v46 = vpop.eup %1892  ;;  %v3132_v17 = vmul.f32 %v3123_v59, %v3084_v35  ;;  %v1250_v43 = vadd.f32 -0.28449672, %v1242_v31  ;;  %v1211_v42 = vmul.f32 1.0614054, %v3138_v37  ;;  %v1146_v49 = vor.u32 1.1754944e-38, %v1145_v18 }
 0x24d   : > { %v3145_v33 = vpop.eup %1894  ;;  %v1152_v50 = vmul.f32 %v3080_v36, %v1151_v1  ;;  %v1265_v57 = vadd.f32 0.2548296, %v1257_v39  ;;  %vm1155_vm12 = vweird.f32 %v3080_v36  ;;  %vm1154_vm13 = vweird.f32 %v3021_v9 }
 0x24e   : > { %v1181_v44 = vsub.f32 1.0, %v3132_v17  ;;  %v1258_v51 = vmul.f32 %v1250_v43, %v3078_v53  ;;  %v1219_v30 = vadd.f32 -1.4531521, %v1211_v42  ;;  %v3151_v13 = vsel %vm1144_vm11, %v1146_v49, %v1142_v38  ;;  %vm3159_vm14 = vmor %vm1154_vm13, %vm1155_vm12 }
 0x24f   : > { %v1153_v41 = vadd.f32 %v3080_v36, %v1152_v50  ;;  %v1158_v8 = vand.u32 2147483647, %v3021_v9  ;;  %v1273_v20 = vmul.f32 %v1265_v57, %v3069_v54  ;;  %v1212_v1 = vmul.f32 1.0614054, %v3151_v13 }
 0x250   : > { %v1266_v47 = vadd.f32 0.2548296, %v1258_v51  ;;  %v1227_v40 = vmul.f32 %v1219_v30, %v3138_v37  ;;  %v3163_v16 = vpop.eup %1896  ;;  %v1195_v45 = vmul.f32 %v3145_v33, %v3093_v12  ;;  %v1160_v54 = vand.u32 2147483648, %v3021_v9 }
 0x251   : > { %v1157_v58 = vsel %vm3159_vm14, %v3080_v36, %v1153_v41  ;;  %vm1159_vm15 = vcmp.eq.f32.partialorder %v1158_v8, 8.507059e+37  ;;  %v1313_v34 = vmul.f32 %v3027_v0, %v1273_v20  ;;  %v1220_v17 = vadd.f32 -1.4531521, %v1212_v1 }
 0x252   : > { %v1274_v28 = vmul.f32 %v1266_v47, %v3078_v53  ;;  %v1235_v22 = vadd.f32 1.4214138, %v1227_v40  ;;  %v1161_v29 = vor.u32 1.1754944e-38, %v1160_v54  ;;  %v1167_v31 = vmul.f32 %v3090_v14, %v1166_v5 }
 0x253   : > { %vm1169_vm0 = vweird.f32 %v3029_v7  ;;  %vm1170_vm1 = vweird.f32 %v3090_v14  ;;  %v1321_v18 = vsub.f32 1.0, %v1313_v34  ;;  %v1228_v9 = vmul.f32 %v1220_v17, %v3151_v13 }
 0x254   : > { %v1314_v39 = vmul.f32 %v3051_v3, %v1274_v28  ;;  %v1243_v36 = vmul.f32 %v1235_v22, %v3138_v37  ;;  %v3179_v43 = vsel %vm1159_vm15, %v1161_v29, %v1157_v58  ;;  %v1168_v0 = vadd.f32 %v3090_v14, %v1167_v31  ;;  %vm1171_vm2 = vmor %vm1169_vm0, %vm1170_vm1 }
 0x255   : > { %v1173_v53 = vand.u32 2147483647, %v3029_v7  ;;  %v1175_v42 = vand.u32 2147483648, %v3029_v7  ;;  %v1329_v5 = vmul.f32 %v1321_v18, %v2964_v27  ;;  %v1236_v50 = vadd.f32 1.4214138, %v1228_v9 }
 0x256   : > { %v1322_v38 = vsub.f32 1.0, %v1314_v39  ;;  %v1251_v49 = vadd.f32 -0.28449672, %v1243_v36  ;;  %v1213_v3 = vmul.f32 1.0614054, %v3179_v43  ;;  %v1172_v57 = vsel %vm1171_vm2, %v3090_v14, %v1168_v0 }
 0x257   : > { %vm1174_vm3 = vcmp.eq.f32.partialorder %v1173_v53, 8.507059e+37  ;;  %v1176_v51 = vor.u32 1.1754944e-38, %v1175_v42  ;;  %v1337_v30 = vadd.f32 1.0, %v1329_v5  ;;  %v1244_v20 = vmul.f32 %v1236_v50, %v3151_v13 }
 0x258   : > { %v1330_v41 = vmul.f32 %v1322_v38, %v2970_v23  ;;  %v1259_v8 = vmul.f32 %v1251_v49, %v3138_v37  ;;  %vm1052_vm4 = vcmp.ge.f32.partialorder %v2917_v19, 0.0  ;;  %v1196_v27 = vsub.f32 1.0, %v1195_v45 }
 0x259   : > { %v1221_v7 = vadd.f32 -1.4531521, %v1213_v3  ;;  %v3191_v47 = vsel %vm1174_vm3, %v1176_v51, %v1172_v57  ;;  %v1182_v40 = vmul.f32 %v3123_v59, %v1181_v44  ;;  %v1345_v1 = vmul.f32 %v1337_v30, %v2924_v52 }
 0x25a   : > { %v1338_v14 = vadd.f32 1.0, %v1330_v41  ;;  %v1267_v6 = vadd.f32 0.2548296, %v1259_v8  ;;  %v1252_v58 = vadd.f32 -0.28449672, %v1244_v20  ;;  %vm1184_vm5 = vweird.f32 %v3084_v35 }
 0x25b   : > { %v1229_v54 = vmul.f32 %v1221_v7, %v3179_v43  ;;  %v1214_v23 = vmul.f32 1.0614054, %v3191_v47  ;;  %v1183_v34 = vadd.f32 %v3123_v59, %v1182_v40  ;;  %1405 = vmatmul.f32.vlgmr.msra.gmra.mxu2 %v1345_v1  ;;  %vm1185_vm6 = vweird.f32 %v3123_v59 }
 0x25c   : > { %v1346_v45 = vmul.f32 %v1338_v14, %v2934_v60  ;;  %v1275_v28 = vmul.f32 %v1267_v6, %v3138_v37  ;;  %v1260_v44 = vmul.f32 %v1252_v58, %v3151_v13  ;;  %v1188_v17 = vand.u32 2147483647, %v3084_v35  ;;  %vm3207_vm7 = vmor %vm1184_vm5, %vm1185_vm6 }
 0x25d   : > { %v1237_v52 = vadd.f32 1.4214138, %v1229_v54  ;;  %v1222_v22 = vadd.f32 -1.4531521, %v1214_v23  ;;  %v1197_v29 = vmul.f32 %v3145_v33, %v1196_v27  ;;  %1898 = vpow2.f32 %v3136_v63 }
 0x25e   : > { %1434 = vmatmul.f32.vlgmr.msra.gmra.mxu3 %v1346_v45  ;;  %v1315_v31 = vmul.f32 %v3106_v62, %v1275_v28  ;;  %v1268_v18 = vadd.f32 0.2548296, %v1260_v44  ;;  %v1190_v37 = vand.u32 2147483648, %v3084_v35  ;;  %v1287_v39 = vsub.f32 0.0, %v3058_v11 }
 0x25f   : > { %v1245_v36 = vmul.f32 %v1237_v52, %v3179_v43  ;;  %v1230_v9 = vmul.f32 %v1222_v22, %v3191_v47  ;;  %v1187_v63 = vsel %vm3207_vm7, %v3123_v59, %v1183_v34  ;;  %vm1189_vm8 = vcmp.eq.f32.partialorder %v1188_v17, 8.507059e+37 }
 0x260   : > { %v1323_v0 = vsub.f32 1.0, %v1315_v31  ;;  %v1276_v62 = vmul.f32 %v1268_v18, %v3151_v13  ;;  %v1191_v53 = vor.u32 1.1754944e-38, %v1190_v37  ;;  %v1198_v38 = vadd.f32 %v3145_v33, %v1197_v29 }
 0x261   : > { %v1253_v42 = vadd.f32 -0.28449672, %v1245_v36  ;;  %v1238_v5 = vadd.f32 1.4214138, %v1230_v9  ;;  %vm1200_vm9 = vweird.f32 %v3145_v33  ;;  %vm1199_vm10 = vweird.f32 %v3093_v12 }
 0x262   : > { %v1331_v35 = vmul.f32 %v1323_v0, %v3101_v25  ;;  %v1316_v49 = vmul.f32 %v3128_v46, %v1276_v62  ;;  %v1192_v50 = vsel %vm1189_vm8, %v1191_v53, %v1187_v63  ;;  %v1203_v57 = vand.u32 2147483647, %v3093_v12  ;;  %vm3230_vm11 = vmor %vm1199_vm10, %vm1200_vm9 }
 0x263   : > { %v1261_v59 = vmul.f32 %v1253_v42, %v3179_v43  ;;  %v1246_v3 = vmul.f32 %v1238_v5, %v3191_v47  ;;  %v1215_v13 = vmul.f32 1.0614054, %v1192_v50  ;;  %v1899_v51 = vpop.eup %1898  ;;  %v1060_v41 = vsel %vm1052_vm4, 1.0, %v2259_v21 }
 0x264   : > { %v1339_v30 = vadd.f32 1.0, %v1331_v35  ;;  %v1324_v8 = vsub.f32 1.0, %v1316_v49  ;;  %v1205_v46 = vand.u32 2147483648, %v3093_v12  ;;  %v1202_v40 = vsel %vm3230_vm11, %v3145_v33, %v1198_v38 }
 0x265   : > { %v1269_v20 = vadd.f32 0.2548296, %v1261_v59  ;;  %v1254_v27 = vadd.f32 -0.28449672, %v1246_v3  ;;  %v1223_v7 = vadd.f32 -1.4531521, %v1215_v13  ;;  %v1295_v1 = vmul.f32 %v1287_v39, %v3058_v11 }
 0x266   : > { %v1347_v14 = vmul.f32 %v1339_v30, %v2985_v32  ;;  %v1332_v19 = vmul.f32 %v1324_v8, %v1060_v41  ;;  %v1206_v6 = vor.u32 1.1754944e-38, %v1205_v46  ;;  %vm1204_vm12 = vcmp.eq.f32.partialorder %v1203_v57, 8.507059e+37 }
 0x267   : > { %v1277_v58 = vmul.f32 %v1269_v20, %v3179_v43  ;;  %v1262_v54 = vmul.f32 %v1254_v27, %v3191_v47  ;;  %v1231_v23 = vmul.f32 %v1223_v7, %v1192_v50  ;;  %vm1053_vm13 = vcmp.ge.f32.partialorder %v2973_v15, 0.0 }
 0x268   : > { %v1288_v12 = vsub.f32 0.0, %v3074_v24  ;;  %1408 = vmatmul.f32.gmra.mxu2 %v1347_v14  ;;  %v1340_v34 = vadd.f32 1.0, %v1332_v19  ;;  %v1207_v45 = vsel %vm1204_vm12, %v1206_v6, %v1202_v40  ;;  %v1309_v44 = vmul.f32 1.442695, %v1295_v1 }
 0x269   : > { %v1317_v33 = vmul.f32 %v3163_v16, %v1277_v58  ;;  %v1270_v11 = vadd.f32 0.2548296, %v1262_v54  ;;  %v1239_v28 = vadd.f32 1.4214138, %v1231_v23  ;;  %v1216_v32 = vmul.f32 1.0614054, %v1207_v45 }
 0x26a   : > { %v1348_v52 = vmul.f32 %v1340_v34, %v2995_v4  ;;  %vm1054_vm14 = vcmp.ge.f32.partialorder %v2981_v56, 0.0  ;;  %v1296_v31 = vmul.f32 %v1288_v12, %v3074_v24  ;;  %v1061_v16 = vsel %vm1053_vm13, 1.0, %v2259_v21  ;;  %v1905_v34 = vld [vmem:[%s2574_s24 + $0x8] sm:$0xff] }
 0x26b   : > { %v1325_v43 = vsub.f32 1.0, %v1317_v33  ;;  %v1278_v22 = vmul.f32 %v1270_v11, %v3191_v47  ;;  %v1247_v17 = vmul.f32 %v1239_v28, %v1192_v50  ;;  %v1224_v29 = vadd.f32 -1.4531521, %v1216_v32 }
 0x26c   : > { %1437 = vmatmul.f32.gmra.mxu3 %v1348_v52  ;;  %v1037_v4 = vmul.f32 0.5, %v2951_v10  ;;  %1900 = vpow2.f32 %v1309_v44  ;;  %v1311_v0 = vmul.f32 1.442695, %v1296_v31  ;;  %v1062_v56 = vsel %vm1054_vm14, 1.0, %v2259_v21  ;;  %v1906_v44 = vld [vmem:[%s2574_s24 + $0x10] sm:$0xff]  ;;  %v1907_v31 = vld [vmem:[%s2574_s24 + $0x18] sm:$0xff] }
 0x26d   : > { %v1333_v18 = vmul.f32 %v1325_v43, %v1061_v16  ;;  %v1318_v60 = vmul.f32 %v1899_v51, %v1278_v22  ;;  %v1255_v37 = vadd.f32 -0.28449672, %v1247_v17  ;;  %v1232_v39 = vmul.f32 %v1224_v29, %v1207_v45 }
 0x26e   : > { %v1038_v15 = vmul.f32 0.5, %v2957_v48  ;;  %1902 = vpow2.f32 %v1311_v0  ;;  %vm1055_vm15 = vcmp.ge.f32.partialorder %v3046_v2, 0.0  ;;  %v1039_v8 = vmul.f32 0.5, %v3016_v55  ;;  %v1861_v55 = vld [vmem:[%s574_s5] ss:$0 sm:$0xff] }
 0x26f   : > { %v1341_v36 = vadd.f32 1.0, %v1333_v18  ;;  %v1326_v47 = vsub.f32 1.0, %v1318_v60  ;;  %v1263_v9 = vmul.f32 %v1255_v37, %v1192_v50  ;;  %v1240_v63 = vadd.f32 1.4214138, %v1232_v39 }
 0x270   : > { %v1063_v51 = vsel %vm1055_vm15, 1.0, %v2259_v21  ;;  %vm1056_vm0 = vcmp.ge.f32.partialorder %v3061_v26, 0.0  ;;  %v1040_v7 = vmul.f32 0.5, %v3024_v61 }
 0x271   : > { %v1349_v24 = vmul.f32 %v1341_v36, %v1037_v4  ;;  %v1334_v62 = vmul.f32 %v1326_v47, %v1062_v56  ;;  %v1271_v53 = vadd.f32 0.2548296, %v1263_v9  ;;  %v1248_v42 = vmul.f32 %v1240_v63, %v1207_v45 }
 0x272   : > { %v1901_v49 = vpop.eup %1900  ;;  %v1064_v20 = vsel %vm1056_vm0, 1.0, %v2259_v21  ;;  %v1904_v21 = vld [vmem:[%s2574_s24] sm:$0xff] }
 0x273   : > { %1411 = vmatmul.f32.gmra.mxu2 %v1349_v24  ;;  %v1342_v5 = vadd.f32 1.0, %v1334_v62  ;;  %v1279_v38 = vmul.f32 %v1271_v53, %v1192_v50  ;;  %v1256_v35 = vadd.f32 -0.28449672, %v1248_v42 }
 0x274   : > { %v1903_v48 = vpop.eup %1902 }
 0x275   : > { %v1350_v10 = vmul.f32 %v1342_v5, %v1038_v15  ;;  %v1319_v59 = vmul.f32 %v1901_v49, %v1279_v38  ;;  %v1264_v3 = vmul.f32 %v1256_v35, %v1207_v45 }
 0x277   : > { %1440 = vmatmul.f32.gmra.mxu3 %v1350_v10  ;;  %v1327_v13 = vsub.f32 1.0, %v1319_v59  ;;  %v1272_v57 = vadd.f32 0.2548296, %v1264_v3 }
 0x279   : > { %v1335_v30 = vmul.f32 %v1327_v13, %v1063_v51  ;;  %v1280_v41 = vmul.f32 %v1272_v57, %v1207_v45 }
 0x27b   : > { %v1343_v50 = vadd.f32 1.0, %v1335_v30  ;;  %v1320_v25 = vmul.f32 %v1903_v48, %v1280_v41 }
 0x27d   : > { %v1351_v2 = vmul.f32 %v1343_v50, %v1039_v8  ;;  %v1328_v46 = vsub.f32 1.0, %v1320_v25 }
 0x27f   : > { %1414 = vmatmul.f32.gmra.mxu2 %v1351_v2  ;;  %v1336_v27 = vmul.f32 %v1328_v46, %v1064_v20 }
 0x281   : > { %v1344_v40 = vadd.f32 1.0, %v1336_v27 }
 0x283   : > { %v1352_v1 = vmul.f32 %v1344_v40, %v1040_v7 }
 0x285   : > { %1443 = vmatmul.f32.gmra.mxu3 %v1352_v1 }
 0x2de   : > { %v1406_v26 = vpop.f32.mrf.mxu2 }
 0x2df   : > { %v1407_v14 = vadd.f32 %v1861_v55, %v1406_v26 }
 0x2e1   : > { %v1435_v19 = vpop.f32.mrf.mxu3 }
 0x2e2   : > { %v1436_v6 = vadd.f32 %v1435_v19, %v1407_v14 }
 0x2e4   : > { %v1447_v58 = vadd.f32 %v1904_v21, %v1436_v6 }
 0x2e6   : > { %1451 = vst [vmem:[%s2574_s24] sm:$0xff] %v1447_v58 }
 0x2eb   : > { %v1409_v61 = vpop.f32.mrf.mxu2 }
 0x2ec   : > { %v1410_v54 = vadd.f32 %v1861_v55, %v1409_v61 }
 0x2ef   : > { %v1438_v23 = vpop.f32.mrf.mxu3 }
 0x2f0   : > { %v1439_v12 = vadd.f32 %v1438_v23, %v1410_v54 }
 0x2f2   : > { %v1448_v45 = vadd.f32 %v1905_v34, %v1439_v12 }
 0x2f4   : > { %1452 = vst [vmem:[%s2574_s24 + $0x8] sm:$0xff] %v1448_v45 }
 0x2f6   : > { %v1412_v33 = vpop.f32.mrf.mxu2 }
 0x2f7   : > { %v1413_v11 = vadd.f32 %v1861_v55, %v1412_v33 }
 0x2fa   : > { %v1441_v28 = vpop.f32.mrf.mxu3 }
 0x2fb   : > { %v1442_v32 = vadd.f32 %v1441_v28, %v1413_v11 }
 0x2fd   : > { %v1449_v52 = vadd.f32 %v1906_v44, %v1442_v32 }
 0x2ff   : > { %1453 = vst [vmem:[%s2574_s24 + $0x10] sm:$0xff] %v1449_v52 }
 0x302   : > { %v1415_v43 = vpop.f32.mrf.mxu2 }
 0x303   : > { %v1416_v22 = vadd.f32 %v1861_v55, %v1415_v43 }
 0x308   : > { %v1444_v17 = vpop.f32.mrf.mxu3 }
 0x309   : > { %v1445_v29 = vadd.f32 %v1444_v17, %v1416_v22 }
 0x30b   : > { %v1450_v16 = vadd.f32 %v1907_v31, %v1445_v29 }
 0x30d   : > { %1454 = vst [vmem:[%s2574_s24 + $0x18] sm:$0xff] %v1450_v16 }
 0x30e   : > { %2145 = shalt.err (!%p2142_p1)
}
 0x30f   : > { %s2260_s0 = smov 128   ;;  %s2261_s22 = smov 8  }
 0x310   : > { %1733 = dma.vmem_to_hbm [thread:$0]  (%p2471_p0), %s1469_s11, 512, %s1471_s30, %s1456_s25, %s2260_s0, %s2260_s0, %s2261_s22  }
 0x311 PF: > { %s3404_s24 = sld [smem:[#allocation21_spill]]  ;;  %p1762_p11 = scmp.ge.s32.totalorder %s2252_s15, 2 }
 0x313   : > { %p1758_p2 = pnand %p1762_p11, %p2478_p8 }
 0x315   : > { %p1759_p13 = pneg %p1758_p2 }
 0x317   : > { %s1485_s10 = sand.u32 1, %s3404_s24  }
 0x318   : > { %s1486_s26 = scalar_lea.sflag [#allocation4], %s1485_s10 }
 0x319   : > { %2207 = dma.done.wait (%p1759_p13), %s1486_s26, 512  }
 0x31a   : > { %2209 = vsyncadd (%p1759_p13), %s1486_s26, 4294966784  ;;  %s33_s15 = sadd.s32 1, %s2252_s15   ;;  %s3405_s23 = sld [smem:[#allocation20_spill]] }
 0x31b   : > { %p30_p9 = scmp.ge.s32.totalorder %s33_s15, 8   ;;  %s3406_s29 = sld [smem:[#allocation28_spill]] }
 0x31c   : > { %s3407_s18 = sld [smem:[#allocation22_spill]]  ;;  %s3412_s27 = smov %s2216_s28 }
 0x31d   : > { %s3408_s10 = sld [smem:[#allocation30_spill]]  ;;  %s3414_s30 = smov %s2228_s9 }
 0x31e   : > { %s3409_s12 = sld [smem:[#allocation25_spill]]  ;;  %s3416_s11 = smov %s2244_s13 }
 0x31f   : > { %s3410_s8 = sld [smem:[#allocation26_spill]] }
 0x320   : > { %s3411_s14 = sld [smem:[#allocation29_spill]]  ;;  %s3413_s28 = smov %s3405_s23 }
 0x321   :  { %32 = sbr.rel (!%p30_p9) target bundleno = 22 (0x16), region = 176 }
 0x322   : > { %s3415_s9 = smov %s3407_s18 }
 0x325   : > { %s3417_s13 = smov %s3410_s8 }
 0x326   :  { %1492 = vsyncpa [#allocation3], 1 }
 0x327   :  { %1494 = vsyncpa [#allocation3 + $0x1], 1 }
 0x328   :  { %1495 = vsyncpa [#allocation6], 1 }
 0x329   :  { %1497 = vsyncpa [#allocation6 + $0x1], 1 }
 0x32a   :  { %1498 = vsyncpa [#allocation9], 1 }
 0x32b   :  { %1500 = vsyncpa [#allocation9 + $0x1], 1 }
 0x32c   :  { %1501 = vsyncpa [#allocation12], 1 }
 0x32d   :  { %1503 = vsyncpa [#allocation12 + $0x1], 1 }
 0x32e   :  { %1504 = vsyncpa [#allocation4], 1 }
 0x32f   :  { %1506 = vsyncpa [#allocation4 + $0x1], 1 }

</bundles_post_ra>
